<compile_context>
chip_gen: v6e
topology: v6e:2x2x1
jax: 0.10.0
libtpu: 0.0.40
codegen_flags: <defaults>
</compile_context>

<pallas_src>
import functools
import math

import jax
import jax.numpy as jnp
from jax import lax
from jax.experimental import pallas as pl
from jax.experimental.pallas import tpu as pltpu


# ----------------------------------------------------------------------------
# In-kernel helpers
# ----------------------------------------------------------------------------
def _layernorm(v, g, b):
    # PyTorch nn.LayerNorm semantics (biased variance, eps=1e-5).
    mu = jnp.mean(v, axis=-1, keepdims=True)
    var = jnp.mean(jnp.square(v - mu), axis=-1, keepdims=True)
    return (v - mu) * lax.rsqrt(var + 1e-5) * g + b


def _gelu_tanh(v):
    # tanh-approx GELU: |err vs exact erf-GELU| <~ 1e-3 (far below the 5e-2
    # check tolerance); tanh runs on the EUP so the (M, F) nonlinearity stops
    # loading the VALU.
    c = 0.7978845608028654  # sqrt(2/pi)
    return 0.5 * v * (1.0 + jnp.tanh(c * (v + 0.044715 * (v * v * v))))


# ----------------------------------------------------------------------------
# Fused decoder-layer kernel: one invocation processes the whole (B*T, D) slab
# ----------------------------------------------------------------------------
def _decoder_layer_kernel(x_ref, vec_ref, wqkv_ref, bqkv_ref, wo_ref,
                          w1_ref, b1_ref, w2_ref, o_ref,
                          *, batch, seq, n_heads, d_head):
    f32, bf16 = jnp.float32, jnp.bfloat16
    x = x_ref[...]                                  # (B*T, D), f32
    D = x.shape[-1]

    vec = vec_ref[...]                              # (6, D) packed small vectors
    ln1_g, ln1_b = vec[0:1, :], vec[1:2, :]
    ln2_g, ln2_b = vec[2:3, :], vec[3:4, :]
    b_o, b2 = vec[4:5, :], vec[5:6, :]

    # ---- pre-LN causal multi-head self-attention ----
    h = _layernorm(x, ln1_g, ln1_b)
    # Single lane-dense (B*T, D) x (D, 3D) QKV projection (bf16 ops, f32 acc).
    # The 1/sqrt(d_k) attention scale is pre-folded into the Q columns of
    # wqkv/bqkv at parameter-prep time.
    qkv = jnp.dot(h.astype(bf16), wqkv_ref[...],
                  preferred_element_type=f32) + bqkv_ref[...]   # (B*T, 3D)

    row = lax.broadcasted_iota(jnp.int32, (seq, seq), 0)
    col = lax.broadcasted_iota(jnp.int32, (seq, seq), 1)
    causal = col <= row                             # tril mask, built once

    # TODO(synk): for large T move to a flash-style KV-tiled loop with online
    # softmax instead of materializing (T, T) scores per head; for large
    # n_heads switch these static Python loops to lax.fori_loop(unroll=True).
    ctx_rows = []
    for b in range(batch):                          # static (B small)
        qkv_b = qkv[b * seq:(b + 1) * seq]          # (T, 3D)
        heads = []
        for hd in range(n_heads):                   # static (H small)
            lo = hd * d_head
            q = qkv_b[:, lo:lo + d_head]                        # (T, dk) pre-scaled
            k = qkv_b[:, D + lo:D + lo + d_head]
            v = qkv_b[:, 2 * D + lo:2 * D + lo + d_head]
            s = lax.dot_general(q.astype(bf16), k.astype(bf16),
                                dimension_numbers=(((1,), (1,)), ((), ())),
                                preferred_element_type=f32)     # (T, T)
            s = jnp.where(causal, s, -1e30)         # NaN-safe large-finite fill
            m = jnp.max(s, axis=-1, keepdims=True)
            p = jnp.exp(s - m)
            l = jnp.sum(p, axis=-1, keepdims=True)
            o_h = jnp.dot(p.astype(bf16), v.astype(bf16),
                          preferred_element_type=f32)           # (T, dk) unnormalized
            # Deferred softmax normalization on the (T, dk) output via the EUP
            # reciprocal (free VLIW slot) instead of dividing (T, T) probs.
            heads.append(o_h * pl.reciprocal(l, approx=True))
        ctx_rows.append(jnp.concatenate(heads, axis=-1))        # combine_heads (T, D)
    ctx = jnp.concatenate(ctx_rows, axis=0)                     # (B*T, D)

    # Single lane-dense output projection (K = D) replaces per-head K=dk dots.
    attn = jnp.dot(ctx.astype(bf16), wo_ref[...],
                   preferred_element_type=f32) + b_o
    x = x + attn                                    # mha_dropout: identity (eval)

    # ---- pre-LN feed-forward: Linear -> GELU -> Linear ----
    h2 = _layernorm(x, ln2_g, ln2_b)
    f = jnp.dot(h2.astype(bf16), w1_ref[...],
                preferred_element_type=f32) + b1_ref[...]
    f = _gelu_tanh(f)
    f = jnp.dot(f.astype(bf16), w2_ref[...],
                preferred_element_type=f32) + b2
    # NOTE: D=64 < 128 lanes means this store is a masked half-lane vst;
    # negligible at this size and disappears once D >= 128.
    o_ref[...] = x + f                              # ff_dropout: identity (eval)


# ----------------------------------------------------------------------------
# One-time weight relayout (PyTorch [out, in] -> kernel-ready), OUTSIDE jit
# ----------------------------------------------------------------------------
def prepare_decoder_params(params, *, n_heads):
    f32, bf16 = jnp.float32, jnp.bfloat16
    D = params["ln1_g"].shape[0]
    dk = D // n_heads
    scale = 1.0 / math.sqrt(dk)

    w_qkv_t = params["w_qkv"].T.astype(f32)                 # (D, 3D)
    b_qkv = params["b_qkv"].astype(f32)                     # (3D,)
    # Fold the 1/sqrt(d_k) attention scale into the Q projection (constant fold
    # at prep time; q is only ever used in the score matmul).
    w_qkv_t = w_qkv_t.at[:, :D].multiply(scale)
    b_qkv = b_qkv.at[:D].multiply(scale)

    vec = jnp.stack([params["ln1_g"], params["ln1_b"],
                     params["ln2_g"], params["ln2_b"],
                     params["b_o"], params["b2"]], axis=0).astype(f32)   # (6, D)

    return dict(
        vec=vec,
        w_qkv_t=w_qkv_t.astype(bf16),                       # (D, 3D) bf16
        b_qkv=b_qkv.reshape(1, 3 * D),                      # (1, 3D) f32
        w_o_t=params["w_o"].T.astype(bf16),                 # (D, D)  bf16
        w1_t=params["w1"].T.astype(bf16),                   # (D, F)  bf16
        b1=params["b1"].astype(f32).reshape(1, -1),         # (1, F)  f32
        w2_t=params["w2"].T.astype(bf16),                   # (F, D)  bf16
    )


def _full_block_2d(arr):
    # Whole-array resident VMEM block (grid-invariant -> DMA'd once).
    return pl.BlockSpec(arr.shape, lambda i: (0, 0))


# ----------------------------------------------------------------------------
# Wrapper: one pallas_call, single grid step over the flattened (B*T, D) slab
# ----------------------------------------------------------------------------
def decoder_layer_forward(prepped, x, *, n_heads):
    B, T, D = x.shape
    assert D % n_heads == 0, "n_embed must be divisible by n_heads"
    dk = D // n_heads
    M = B * T
    f32 = jnp.float32
    x2 = x.reshape(M, D).astype(f32)                # free HBM reshape under jit

    kern = functools.partial(_decoder_layer_kernel,
                             batch=B, seq=T, n_heads=n_heads, d_head=dk)

    args = (x2, prepped["vec"], prepped["w_qkv_t"], prepped["b_qkv"],
            prepped["w_o_t"], prepped["w1_t"], prepped["b1"], prepped["w2_t"])

    out = pl.pallas_call(
        kern,
        out_shape=jax.ShapeDtypeStruct((M, D), f32),
        grid=(1,),
        in_specs=[_full_block_2d(a) for a in args],
        out_specs=pl.BlockSpec((M, D), lambda i: (0, 0)),
        # Single grid step: on single-TC chips (v5e/v6e) the grid is a serial
        # loop, so collapsing it removes per-step pipeline overhead for this
        # overhead-bound size.  On v7x one could instead keep grid=(B,) with
        # dimension_semantics=("parallel",) to shard batch across its 2 TCs.
        compiler_params=pltpu.CompilerParams(
            dimension_semantics=("arbitrary",)),
        # TODO(synk): at realistic D/F (>=1024/4096) tile the FFN contraction
        # over a grid axis (or use pipeline_mode=pl.Buffered(1) on the weight
        # specs + vmem_limit_bytes) so w1/w2 are not whole-array resident on
        # v7x's 64 MiB VMEM.
    )(*args)
    return out.reshape(B, T, D)


# ----------------------------------------------------------------------------
# Pure-JAX reference (mirrors the PyTorch DecoderLayer forward exactly)
# ----------------------------------------------------------------------------
def decoder_layer_reference(params, x, n_heads):
    B, T, D = x.shape
    dk = D // n_heads

    def ln(v, g, b):
        mu = v.mean(-1, keepdims=True)
        var = ((v - mu) ** 2).mean(-1, keepdims=True)
        return (v - mu) * lax.rsqrt(var + 1e-5) * g + b

    h = ln(x, params["ln1_g"], params["ln1_b"])
    qkv = h @ params["w_qkv"].T + params["b_qkv"]
    q, k, v = jnp.split(qkv, 3, axis=-1)

    def split(z):
        return z.reshape(B, T, n_heads, dk).transpose(0, 2, 1, 3)

    q, k, v = split(q), split(k), split(v)
    s = jnp.einsum("bhqd,bhkd->bhqk", q, k) / math.sqrt(dk)
    mask = jnp.tril(jnp.ones((T, T), bool))
    s = jnp.where(mask[None, None], s, -jnp.inf)
    a = jax.nn.softmax(s, axis=-1)
    o = jnp.einsum("bhqk,bhkd->bhqd", a, v).transpose(0, 2, 1, 3).reshape(B, T, D)
    x = x + (o @ params["w_o"].T + params["b_o"])

    h2 = ln(x, params["ln2_g"], params["ln2_b"])
    f = h2 @ params["w1"].T + params["b1"]
    f = jax.nn.gelu(f, approximate=False)
    f = f @ params["w2"].T + params["b2"]
    return x + f


# ----------------------------------------------------------------------------
# Main
# ----------------------------------------------------------------------------
if __name__ == "__main__":
    B, T = 2, 32                    # batch, sequence (<= tfmr_input_size)
    D, H, F = 64, 4, 128            # n_embed, n_heads, n_ff

    key = jax.random.PRNGKey(0)
    ks = jax.random.split(key, 10)

    def nrm(k, shape, scale):
        return (scale * jax.random.normal(k, shape)).astype(jnp.float32)

    s_in = 1.0 / math.sqrt(D)
    s_ff = 1.0 / math.sqrt(F)
    # Parameters kept in PyTorch nn.Linear layout ([out_features, in_features]).
    params = dict(
        ln1_g=jnp.ones((D,), jnp.float32), ln1_b=jnp.zeros((D,), jnp.float32),
        w_qkv=nrm(ks[0], (3 * D, D), s_in), b_qkv=nrm(ks[1], (3 * D,), 0.02),
        w_o=nrm(ks[2], (D, D), s_in),       b_o=nrm(ks[3], (D,), 0.02),
        ln2_g=jnp.ones((D,), jnp.float32), ln2_b=jnp.zeros((D,), jnp.float32),
        w1=nrm(ks[4], (F, D), s_in),        b1=nrm(ks[5], (F,), 0.02),
        w2=nrm(ks[6], (D, F), s_ff),        b2=nrm(ks[7], (D,), 0.02),
    )
    x = nrm(ks[8], (B, T, D), 1.0)

    # One-time layout conversion (outside the jitted per-call path).
    prepped = prepare_decoder_params(params, n_heads=H)

    fwd = jax.jit(functools.partial(decoder_layer_forward, n_heads=H))
    out = jax.block_until_ready(fwd(prepped, x))

    with jax.default_matmul_precision("highest"):
        ref = decoder_layer_reference(params, x, H)
    ref = jax.block_until_ready(ref)

    assert out.shape == (B, T, D), out.shape
    assert bool(jnp.all(jnp.isfinite(out)))
    max_err = float(jnp.max(jnp.abs(out - ref)))
    assert max_err < 5e-2, f"max |pallas - reference| = {max_err}"

    print("KERNEL_OK")
</pallas_src>

<mosaic_0001>
module attributes {stable_mosaic.version = 11 : i64} {
  func.func @_decoder_layer_kernel(%arg0: i32, %arg1: memref<64x64xf32, #tpu.memory_space<vmem>>, %arg2: memref<6x64xf32, #tpu.memory_space<vmem>>, %arg3: memref<64x192xbf16, #tpu.memory_space<vmem>>, %arg4: memref<1x192xf32, #tpu.memory_space<vmem>>, %arg5: memref<64x64xbf16, #tpu.memory_space<vmem>>, %arg6: memref<64x128xbf16, #tpu.memory_space<vmem>>, %arg7: memref<1x128xf32, #tpu.memory_space<vmem>>, %arg8: memref<128x64xbf16, #tpu.memory_space<vmem>>, %arg9: memref<64x64xf32, #tpu.memory_space<vmem>>) attributes {dimension_semantics = [#tpu.dimension_semantics<arbitrary>], iteration_bounds = array<i64: 1>, scalar_prefetch = 0 : i64, scratch_operands = 0 : i64, tpu.core_type = #tpu.core_type<tc>, window_params = [{pipeline_mode = #tpu.pipeline_mode<synchronous>, transform_indices = @transform_0, window_bounds = array<i64: 64, 64>}, {pipeline_mode = #tpu.pipeline_mode<synchronous>, transform_indices = @transform_1, window_bounds = array<i64: 6, 64>}, {pipeline_mode = #tpu.pipeline_mode<synchronous>, transform_indices = @transform_2, window_bounds = array<i64: 64, 192>}, {pipeline_mode = #tpu.pipeline_mode<synchronous>, transform_indices = @transform_3, window_bounds = array<i64: 1, 192>}, {pipeline_mode = #tpu.pipeline_mode<synchronous>, transform_indices = @transform_4, window_bounds = array<i64: 64, 64>}, {pipeline_mode = #tpu.pipeline_mode<synchronous>, transform_indices = @transform_5, window_bounds = array<i64: 64, 128>}, {pipeline_mode = #tpu.pipeline_mode<synchronous>, transform_indices = @transform_6, window_bounds = array<i64: 1, 128>}, {pipeline_mode = #tpu.pipeline_mode<synchronous>, transform_indices = @transform_7, window_bounds = array<i64: 128, 64>}, {pipeline_mode = #tpu.pipeline_mode<synchronous>, transform_indices = @transform_8, window_bounds = array<i64: 64, 64>}]} {
    %c0 = arith.constant 0 : index
    %c0_0 = arith.constant 0 : index
    %0 = vector.load %arg1[%c0, %c0_0] : memref<64x64xf32, #tpu.memory_space<vmem>>, vector<64x64xf32>
    %c0_1 = arith.constant 0 : index
    %c0_2 = arith.constant 0 : index
    %1 = vector.load %arg2[%c0_1, %c0_2] : memref<6x64xf32, #tpu.memory_space<vmem>>, vector<6x64xf32>
    %2 = vector.extract_strided_slice %1 {offsets = [0, 0], sizes = [1, 64], strides = [1, 1]} : vector<6x64xf32> to vector<1x64xf32>
    %3 = vector.extract_strided_slice %1 {offsets = [1, 0], sizes = [1, 64], strides = [1, 1]} : vector<6x64xf32> to vector<1x64xf32>
    %4 = vector.extract_strided_slice %1 {offsets = [2, 0], sizes = [1, 64], strides = [1, 1]} : vector<6x64xf32> to vector<1x64xf32>
    %5 = vector.extract_strided_slice %1 {offsets = [3, 0], sizes = [1, 64], strides = [1, 1]} : vector<6x64xf32> to vector<1x64xf32>
    %6 = vector.extract_strided_slice %1 {offsets = [4, 0], sizes = [1, 64], strides = [1, 1]} : vector<6x64xf32> to vector<1x64xf32>
    %7 = vector.extract_strided_slice %1 {offsets = [5, 0], sizes = [1, 64], strides = [1, 1]} : vector<6x64xf32> to vector<1x64xf32>
    %cst = arith.constant dense<0.000000e+00> : vector<64xf32>
    %8 = vector.multi_reduction <add>, %0, %cst [1] : vector<64x64xf32> to vector<64xf32>
    %9 = vector.shape_cast %8 : vector<64xf32> to vector<64x1xf32>
    %cst_3 = arith.constant 6.400000e+01 : f32
    %10 = vector.broadcast %cst_3 : f32 to vector<64x1xf32>
    %11 = arith.divf %9, %10 : vector<64x1xf32>
    %12 = vector.broadcast %11 : vector<64x1xf32> to vector<64x64xf32>
    %13 = arith.subf %0, %12 : vector<64x64xf32>
    %14 = arith.mulf %13, %13 : vector<64x64xf32>
    %cst_4 = arith.constant dense<0.000000e+00> : vector<64xf32>
    %15 = vector.multi_reduction <add>, %14, %cst_4 [1] : vector<64x64xf32> to vector<64xf32>
    %16 = vector.shape_cast %15 : vector<64xf32> to vector<64x1xf32>
    %cst_5 = arith.constant 6.400000e+01 : f32
    %17 = vector.broadcast %cst_5 : f32 to vector<64x1xf32>
    %18 = arith.divf %16, %17 : vector<64x1xf32>
    %19 = vector.broadcast %11 : vector<64x1xf32> to vector<64x64xf32>
    %20 = arith.subf %0, %19 : vector<64x64xf32>
    %cst_6 = arith.constant 9.99999974E-6 : f32
    %21 = vector.broadcast %cst_6 : f32 to vector<64x1xf32>
    %22 = arith.addf %18, %21 : vector<64x1xf32>
    %23 = math.rsqrt %22 : vector<64x1xf32>
    %24 = vector.broadcast %23 : vector<64x1xf32> to vector<64x64xf32>
    %25 = arith.mulf %20, %24 : vector<64x64xf32>
    %26 = vector.broadcast %2 : vector<1x64xf32> to vector<64x64xf32>
    %27 = arith.mulf %25, %26 : vector<64x64xf32>
    %28 = vector.broadcast %3 : vector<1x64xf32> to vector<64x64xf32>
    %29 = arith.addf %27, %28 : vector<64x64xf32>
    %30 = arith.truncf %29 : vector<64x64xf32> to vector<64x64xbf16>
    %c0_7 = arith.constant 0 : index
    %c0_8 = arith.constant 0 : index
    %31 = vector.load %arg3[%c0_7, %c0_8] : memref<64x192xbf16, #tpu.memory_space<vmem>>, vector<64x192xbf16>
    %cst_9 = arith.constant dense<0.000000e+00> : vector<64x192xf32>
    %32 = tpu.matmul %30, %31, %cst_9 {dimension_numbers = #tpu.dot_dimension_numbers<[1], [0], [0], [1], [0, 0, 1, 1], [], []>} : vector<64x64xbf16>, vector<64x192xbf16>, vector<64x192xf32> -> vector<64x192xf32>
    %c0_10 = arith.constant 0 : index
    %c0_11 = arith.constant 0 : index
    %33 = vector.load %arg4[%c0_10, %c0_11] : memref<1x192xf32, #tpu.memory_space<vmem>>, vector<1x192xf32>
    %34 = vector.broadcast %33 : vector<1x192xf32> to vector<64x192xf32>
    %35 = arith.addf %32, %34 : vector<64x192xf32>
    %36 = tpu.iota {dimensions = array<i32: 0>} : vector<32x32xi32>
    %37 = tpu.iota {dimensions = array<i32: 1>} : vector<32x32xi32>
    %38 = arith.cmpi sle, %37, %36 : vector<32x32xi32>
    %39 = vector.extract_strided_slice %35 {offsets = [0, 0], sizes = [32, 192], strides = [1, 1]} : vector<64x192xf32> to vector<32x192xf32>
    %40 = vector.extract_strided_slice %39 {offsets = [0, 0], sizes = [32, 16], strides = [1, 1]} : vector<32x192xf32> to vector<32x16xf32>
    %41 = vector.extract_strided_slice %39 {offsets = [0, 64], sizes = [32, 16], strides = [1, 1]} : vector<32x192xf32> to vector<32x16xf32>
    %42 = vector.extract_strided_slice %39 {offsets = [0, 128], sizes = [32, 16], strides = [1, 1]} : vector<32x192xf32> to vector<32x16xf32>
    %43 = arith.truncf %40 : vector<32x16xf32> to vector<32x16xbf16>
    %44 = arith.truncf %41 : vector<32x16xf32> to vector<32x16xbf16>
    %cst_12 = arith.constant dense<0.000000e+00> : vector<32x32xf32>
    %45 = tpu.matmul %43, %44, %cst_12 {dimension_numbers = #tpu.dot_dimension_numbers<[1], [1], [0], [0], [0, 0, 1, 0], [], []>} : vector<32x16xbf16>, vector<32x16xbf16>, vector<32x32xf32> -> vector<32x32xf32>
    %cst_13 = arith.constant -1.000000e+30 : f32
    %46 = vector.broadcast %cst_13 : f32 to vector<32x32xf32>
    %47 = arith.select %38, %45, %46 : vector<32x32xi1>, vector<32x32xf32>
    %cst_14 = arith.constant dense<0xFF800000> : vector<32xf32>
    %48 = vector.multi_reduction <maximumf>, %47, %cst_14 [1] : vector<32x32xf32> to vector<32xf32>
    %49 = vector.shape_cast %48 : vector<32xf32> to vector<32x1xf32>
    %50 = vector.broadcast %49 : vector<32x1xf32> to vector<32x32xf32>
    %51 = arith.subf %47, %50 : vector<32x32xf32>
    %52 = math.exp %51 : vector<32x32xf32>
    %cst_15 = arith.constant dense<0.000000e+00> : vector<32xf32>
    %53 = vector.multi_reduction <add>, %52, %cst_15 [1] : vector<32x32xf32> to vector<32xf32>
    %54 = vector.shape_cast %53 : vector<32xf32> to vector<32x1xf32>
    %55 = arith.truncf %52 : vector<32x32xf32> to vector<32x32xbf16>
    %56 = arith.truncf %42 : vector<32x16xf32> to vector<32x16xbf16>
    %cst_16 = arith.constant dense<0.000000e+00> : vector<32x16xf32>
    %57 = tpu.matmul %55, %56, %cst_16 {dimension_numbers = #tpu.dot_dimension_numbers<[1], [0], [0], [1], [0, 0, 1, 1], [], []>} : vector<32x32xbf16>, vector<32x16xbf16>, vector<32x16xf32> -> vector<32x16xf32>
    %58 = tpu.reciprocal %54 {approx = true} : vector<32x1xf32> -> vector<32x1xf32>
    %59 = vector.broadcast %58 : vector<32x1xf32> to vector<32x16xf32>
    %60 = arith.mulf %57, %59 : vector<32x16xf32>
    %61 = vector.extract_strided_slice %39 {offsets = [0, 16], sizes = [32, 16], strides = [1, 1]} : vector<32x192xf32> to vector<32x16xf32>
    %62 = vector.extract_strided_slice %39 {offsets = [0, 80], sizes = [32, 16], strides = [1, 1]} : vector<32x192xf32> to vector<32x16xf32>
    %63 = vector.extract_strided_slice %39 {offsets = [0, 144], sizes = [32, 16], strides = [1, 1]} : vector<32x192xf32> to vector<32x16xf32>
    %64 = arith.truncf %61 : vector<32x16xf32> to vector<32x16xbf16>
    %65 = arith.truncf %62 : vector<32x16xf32> to vector<32x16xbf16>
    %cst_17 = arith.constant dense<0.000000e+00> : vector<32x32xf32>
    %66 = tpu.matmul %64, %65, %cst_17 {dimension_numbers = #tpu.dot_dimension_numbers<[1], [1], [0], [0], [0, 0, 1, 0], [], []>} : vector<32x16xbf16>, vector<32x16xbf16>, vector<32x32xf32> -> vector<32x32xf32>
    %cst_18 = arith.constant -1.000000e+30 : f32
    %67 = vector.broadcast %cst_18 : f32 to vector<32x32xf32>
    %68 = arith.select %38, %66, %67 : vector<32x32xi1>, vector<32x32xf32>
    %cst_19 = arith.constant dense<0xFF800000> : vector<32xf32>
    %69 = vector.multi_reduction <maximumf>, %68, %cst_19 [1] : vector<32x32xf32> to vector<32xf32>
    %70 = vector.shape_cast %69 : vector<32xf32> to vector<32x1xf32>
    %71 = vector.broadcast %70 : vector<32x1xf32> to vector<32x32xf32>
    %72 = arith.subf %68, %71 : vector<32x32xf32>
    %73 = math.exp %72 : vector<32x32xf32>
    %cst_20 = arith.constant dense<0.000000e+00> : vector<32xf32>
    %74 = vector.multi_reduction <add>, %73, %cst_20 [1] : vector<32x32xf32> to vector<32xf32>
    %75 = vector.shape_cast %74 : vector<32xf32> to vector<32x1xf32>
    %76 = arith.truncf %73 : vector<32x32xf32> to vector<32x32xbf16>
    %77 = arith.truncf %63 : vector<32x16xf32> to vector<32x16xbf16>
    %cst_21 = arith.constant dense<0.000000e+00> : vector<32x16xf32>
    %78 = tpu.matmul %76, %77, %cst_21 {dimension_numbers = #tpu.dot_dimension_numbers<[1], [0], [0], [1], [0, 0, 1, 1], [], []>} : vector<32x32xbf16>, vector<32x16xbf16>, vector<32x16xf32> -> vector<32x16xf32>
    %79 = tpu.reciprocal %75 {approx = true} : vector<32x1xf32> -> vector<32x1xf32>
    %80 = vector.broadcast %79 : vector<32x1xf32> to vector<32x16xf32>
    %81 = arith.mulf %78, %80 : vector<32x16xf32>
    %82 = vector.extract_strided_slice %39 {offsets = [0, 32], sizes = [32, 16], strides = [1, 1]} : vector<32x192xf32> to vector<32x16xf32>
    %83 = vector.extract_strided_slice %39 {offsets = [0, 96], sizes = [32, 16], strides = [1, 1]} : vector<32x192xf32> to vector<32x16xf32>
    %84 = vector.extract_strided_slice %39 {offsets = [0, 160], sizes = [32, 16], strides = [1, 1]} : vector<32x192xf32> to vector<32x16xf32>
    %85 = arith.truncf %82 : vector<32x16xf32> to vector<32x16xbf16>
    %86 = arith.truncf %83 : vector<32x16xf32> to vector<32x16xbf16>
    %cst_22 = arith.constant dense<0.000000e+00> : vector<32x32xf32>
    %87 = tpu.matmul %85, %86, %cst_22 {dimension_numbers = #tpu.dot_dimension_numbers<[1], [1], [0], [0], [0, 0, 1, 0], [], []>} : vector<32x16xbf16>, vector<32x16xbf16>, vector<32x32xf32> -> vector<32x32xf32>
    %cst_23 = arith.constant -1.000000e+30 : f32
    %88 = vector.broadcast %cst_23 : f32 to vector<32x32xf32>
    %89 = arith.select %38, %87, %88 : vector<32x32xi1>, vector<32x32xf32>
    %cst_24 = arith.constant dense<0xFF800000> : vector<32xf32>
    %90 = vector.multi_reduction <maximumf>, %89, %cst_24 [1] : vector<32x32xf32> to vector<32xf32>
    %91 = vector.shape_cast %90 : vector<32xf32> to vector<32x1xf32>
    %92 = vector.broadcast %91 : vector<32x1xf32> to vector<32x32xf32>
    %93 = arith.subf %89, %92 : vector<32x32xf32>
    %94 = math.exp %93 : vector<32x32xf32>
    %cst_25 = arith.constant dense<0.000000e+00> : vector<32xf32>
    %95 = vector.multi_reduction <add>, %94, %cst_25 [1] : vector<32x32xf32> to vector<32xf32>
    %96 = vector.shape_cast %95 : vector<32xf32> to vector<32x1xf32>
    %97 = arith.truncf %94 : vector<32x32xf32> to vector<32x32xbf16>
    %98 = arith.truncf %84 : vector<32x16xf32> to vector<32x16xbf16>
    %cst_26 = arith.constant dense<0.000000e+00> : vector<32x16xf32>
    %99 = tpu.matmul %97, %98, %cst_26 {dimension_numbers = #tpu.dot_dimension_numbers<[1], [0], [0], [1], [0, 0, 1, 1], [], []>} : vector<32x32xbf16>, vector<32x16xbf16>, vector<32x16xf32> -> vector<32x16xf32>
    %100 = tpu.reciprocal %96 {approx = true} : vector<32x1xf32> -> vector<32x1xf32>
    %101 = vector.broadcast %100 : vector<32x1xf32> to vector<32x16xf32>
    %102 = arith.mulf %99, %101 : vector<32x16xf32>
    %103 = vector.extract_strided_slice %39 {offsets = [0, 48], sizes = [32, 16], strides = [1, 1]} : vector<32x192xf32> to vector<32x16xf32>
    %104 = vector.extract_strided_slice %39 {offsets = [0, 112], sizes = [32, 16], strides = [1, 1]} : vector<32x192xf32> to vector<32x16xf32>
    %105 = vector.extract_strided_slice %39 {offsets = [0, 176], sizes = [32, 16], strides = [1, 1]} : vector<32x192xf32> to vector<32x16xf32>
    %106 = arith.truncf %103 : vector<32x16xf32> to vector<32x16xbf16>
    %107 = arith.truncf %104 : vector<32x16xf32> to vector<32x16xbf16>
    %cst_27 = arith.constant dense<0.000000e+00> : vector<32x32xf32>
    %108 = tpu.matmul %106, %107, %cst_27 {dimension_numbers = #tpu.dot_dimension_numbers<[1], [1], [0], [0], [0, 0, 1, 0], [], []>} : vector<32x16xbf16>, vector<32x16xbf16>, vector<32x32xf32> -> vector<32x32xf32>
    %cst_28 = arith.constant -1.000000e+30 : f32
    %109 = vector.broadcast %cst_28 : f32 to vector<32x32xf32>
    %110 = arith.select %38, %108, %109 : vector<32x32xi1>, vector<32x32xf32>
    %cst_29 = arith.constant dense<0xFF800000> : vector<32xf32>
    %111 = vector.multi_reduction <maximumf>, %110, %cst_29 [1] : vector<32x32xf32> to vector<32xf32>
    %112 = vector.shape_cast %111 : vector<32xf32> to vector<32x1xf32>
    %113 = vector.broadcast %112 : vector<32x1xf32> to vector<32x32xf32>
    %114 = arith.subf %110, %113 : vector<32x32xf32>
    %115 = math.exp %114 : vector<32x32xf32>
    %cst_30 = arith.constant dense<0.000000e+00> : vector<32xf32>
    %116 = vector.multi_reduction <add>, %115, %cst_30 [1] : vector<32x32xf32> to vector<32xf32>
    %117 = vector.shape_cast %116 : vector<32xf32> to vector<32x1xf32>
    %118 = arith.truncf %115 : vector<32x32xf32> to vector<32x32xbf16>
    %119 = arith.truncf %105 : vector<32x16xf32> to vector<32x16xbf16>
    %cst_31 = arith.constant dense<0.000000e+00> : vector<32x16xf32>
    %120 = tpu.matmul %118, %119, %cst_31 {dimension_numbers = #tpu.dot_dimension_numbers<[1], [0], [0], [1], [0, 0, 1, 1], [], []>} : vector<32x32xbf16>, vector<32x16xbf16>, vector<32x16xf32> -> vector<32x16xf32>
    %121 = tpu.reciprocal %117 {approx = true} : vector<32x1xf32> -> vector<32x1xf32>
    %122 = vector.broadcast %121 : vector<32x1xf32> to vector<32x16xf32>
    %123 = arith.mulf %120, %122 : vector<32x16xf32>
    %124 = tpu.concatenate %60, %81, %102, %123 in 1 : vector<32x16xf32>, vector<32x16xf32>, vector<32x16xf32>, vector<32x16xf32> -> vector<32x64xf32>
    %125 = vector.extract_strided_slice %35 {offsets = [32, 0], sizes = [32, 192], strides = [1, 1]} : vector<64x192xf32> to vector<32x192xf32>
    %126 = vector.extract_strided_slice %125 {offsets = [0, 0], sizes = [32, 16], strides = [1, 1]} : vector<32x192xf32> to vector<32x16xf32>
    %127 = vector.extract_strided_slice %125 {offsets = [0, 64], sizes = [32, 16], strides = [1, 1]} : vector<32x192xf32> to vector<32x16xf32>
    %128 = vector.extract_strided_slice %125 {offsets = [0, 128], sizes = [32, 16], strides = [1, 1]} : vector<32x192xf32> to vector<32x16xf32>
    %129 = arith.truncf %126 : vector<32x16xf32> to vector<32x16xbf16>
    %130 = arith.truncf %127 : vector<32x16xf32> to vector<32x16xbf16>
    %cst_32 = arith.constant dense<0.000000e+00> : vector<32x32xf32>
    %131 = tpu.matmul %129, %130, %cst_32 {dimension_numbers = #tpu.dot_dimension_numbers<[1], [1], [0], [0], [0, 0, 1, 0], [], []>} : vector<32x16xbf16>, vector<32x16xbf16>, vector<32x32xf32> -> vector<32x32xf32>
    %cst_33 = arith.constant -1.000000e+30 : f32
    %132 = vector.broadcast %cst_33 : f32 to vector<32x32xf32>
    %133 = arith.select %38, %131, %132 : vector<32x32xi1>, vector<32x32xf32>
    %cst_34 = arith.constant dense<0xFF800000> : vector<32xf32>
    %134 = vector.multi_reduction <maximumf>, %133, %cst_34 [1] : vector<32x32xf32> to vector<32xf32>
    %135 = vector.shape_cast %134 : vector<32xf32> to vector<32x1xf32>
    %136 = vector.broadcast %135 : vector<32x1xf32> to vector<32x32xf32>
    %137 = arith.subf %133, %136 : vector<32x32xf32>
    %138 = math.exp %137 : vector<32x32xf32>
    %cst_35 = arith.constant dense<0.000000e+00> : vector<32xf32>
    %139 = vector.multi_reduction <add>, %138, %cst_35 [1] : vector<32x32xf32> to vector<32xf32>
    %140 = vector.shape_cast %139 : vector<32xf32> to vector<32x1xf32>
    %141 = arith.truncf %138 : vector<32x32xf32> to vector<32x32xbf16>
    %142 = arith.truncf %128 : vector<32x16xf32> to vector<32x16xbf16>
    %cst_36 = arith.constant dense<0.000000e+00> : vector<32x16xf32>
    %143 = tpu.matmul %141, %142, %cst_36 {dimension_numbers = #tpu.dot_dimension_numbers<[1], [0], [0], [1], [0, 0, 1, 1], [], []>} : vector<32x32xbf16>, vector<32x16xbf16>, vector<32x16xf32> -> vector<32x16xf32>
    %144 = tpu.reciprocal %140 {approx = true} : vector<32x1xf32> -> vector<32x1xf32>
    %145 = vector.broadcast %144 : vector<32x1xf32> to vector<32x16xf32>
    %146 = arith.mulf %143, %145 : vector<32x16xf32>
    %147 = vector.extract_strided_slice %125 {offsets = [0, 16], sizes = [32, 16], strides = [1, 1]} : vector<32x192xf32> to vector<32x16xf32>
    %148 = vector.extract_strided_slice %125 {offsets = [0, 80], sizes = [32, 16], strides = [1, 1]} : vector<32x192xf32> to vector<32x16xf32>
    %149 = vector.extract_strided_slice %125 {offsets = [0, 144], sizes = [32, 16], strides = [1, 1]} : vector<32x192xf32> to vector<32x16xf32>
    %150 = arith.truncf %147 : vector<32x16xf32> to vector<32x16xbf16>
    %151 = arith.truncf %148 : vector<32x16xf32> to vector<32x16xbf16>
    %cst_37 = arith.constant dense<0.000000e+00> : vector<32x32xf32>
    %152 = tpu.matmul %150, %151, %cst_37 {dimension_numbers = #tpu.dot_dimension_numbers<[1], [1], [0], [0], [0, 0, 1, 0], [], []>} : vector<32x16xbf16>, vector<32x16xbf16>, vector<32x32xf32> -> vector<32x32xf32>
    %cst_38 = arith.constant -1.000000e+30 : f32
    %153 = vector.broadcast %cst_38 : f32 to vector<32x32xf32>
    %154 = arith.select %38, %152, %153 : vector<32x32xi1>, vector<32x32xf32>
    %cst_39 = arith.constant dense<0xFF800000> : vector<32xf32>
    %155 = vector.multi_reduction <maximumf>, %154, %cst_39 [1] : vector<32x32xf32> to vector<32xf32>
    %156 = vector.shape_cast %155 : vector<32xf32> to vector<32x1xf32>
    %157 = vector.broadcast %156 : vector<32x1xf32> to vector<32x32xf32>
    %158 = arith.subf %154, %157 : vector<32x32xf32>
    %159 = math.exp %158 : vector<32x32xf32>
    %cst_40 = arith.constant dense<0.000000e+00> : vector<32xf32>
    %160 = vector.multi_reduction <add>, %159, %cst_40 [1] : vector<32x32xf32> to vector<32xf32>
    %161 = vector.shape_cast %160 : vector<32xf32> to vector<32x1xf32>
    %162 = arith.truncf %159 : vector<32x32xf32> to vector<32x32xbf16>
    %163 = arith.truncf %149 : vector<32x16xf32> to vector<32x16xbf16>
    %cst_41 = arith.constant dense<0.000000e+00> : vector<32x16xf32>
    %164 = tpu.matmul %162, %163, %cst_41 {dimension_numbers = #tpu.dot_dimension_numbers<[1], [0], [0], [1], [0, 0, 1, 1], [], []>} : vector<32x32xbf16>, vector<32x16xbf16>, vector<32x16xf32> -> vector<32x16xf32>
    %165 = tpu.reciprocal %161 {approx = true} : vector<32x1xf32> -> vector<32x1xf32>
    %166 = vector.broadcast %165 : vector<32x1xf32> to vector<32x16xf32>
    %167 = arith.mulf %164, %166 : vector<32x16xf32>
    %168 = vector.extract_strided_slice %125 {offsets = [0, 32], sizes = [32, 16], strides = [1, 1]} : vector<32x192xf32> to vector<32x16xf32>
    %169 = vector.extract_strided_slice %125 {offsets = [0, 96], sizes = [32, 16], strides = [1, 1]} : vector<32x192xf32> to vector<32x16xf32>
    %170 = vector.extract_strided_slice %125 {offsets = [0, 160], sizes = [32, 16], strides = [1, 1]} : vector<32x192xf32> to vector<32x16xf32>
    %171 = arith.truncf %168 : vector<32x16xf32> to vector<32x16xbf16>
    %172 = arith.truncf %169 : vector<32x16xf32> to vector<32x16xbf16>
    %cst_42 = arith.constant dense<0.000000e+00> : vector<32x32xf32>
    %173 = tpu.matmul %171, %172, %cst_42 {dimension_numbers = #tpu.dot_dimension_numbers<[1], [1], [0], [0], [0, 0, 1, 0], [], []>} : vector<32x16xbf16>, vector<32x16xbf16>, vector<32x32xf32> -> vector<32x32xf32>
    %cst_43 = arith.constant -1.000000e+30 : f32
    %174 = vector.broadcast %cst_43 : f32 to vector<32x32xf32>
    %175 = arith.select %38, %173, %174 : vector<32x32xi1>, vector<32x32xf32>
    %cst_44 = arith.constant dense<0xFF800000> : vector<32xf32>
    %176 = vector.multi_reduction <maximumf>, %175, %cst_44 [1] : vector<32x32xf32> to vector<32xf32>
    %177 = vector.shape_cast %176 : vector<32xf32> to vector<32x1xf32>
    %178 = vector.broadcast %177 : vector<32x1xf32> to vector<32x32xf32>
    %179 = arith.subf %175, %178 : vector<32x32xf32>
    %180 = math.exp %179 : vector<32x32xf32>
    %cst_45 = arith.constant dense<0.000000e+00> : vector<32xf32>
    %181 = vector.multi_reduction <add>, %180, %cst_45 [1] : vector<32x32xf32> to vector<32xf32>
    %182 = vector.shape_cast %181 : vector<32xf32> to vector<32x1xf32>
    %183 = arith.truncf %180 : vector<32x32xf32> to vector<32x32xbf16>
    %184 = arith.truncf %170 : vector<32x16xf32> to vector<32x16xbf16>
    %cst_46 = arith.constant dense<0.000000e+00> : vector<32x16xf32>
    %185 = tpu.matmul %183, %184, %cst_46 {dimension_numbers = #tpu.dot_dimension_numbers<[1], [0], [0], [1], [0, 0, 1, 1], [], []>} : vector<32x32xbf16>, vector<32x16xbf16>, vector<32x16xf32> -> vector<32x16xf32>
    %186 = tpu.reciprocal %182 {approx = true} : vector<32x1xf32> -> vector<32x1xf32>
    %187 = vector.broadcast %186 : vector<32x1xf32> to vector<32x16xf32>
    %188 = arith.mulf %185, %187 : vector<32x16xf32>
    %189 = vector.extract_strided_slice %125 {offsets = [0, 48], sizes = [32, 16], strides = [1, 1]} : vector<32x192xf32> to vector<32x16xf32>
    %190 = vector.extract_strided_slice %125 {offsets = [0, 112], sizes = [32, 16], strides = [1, 1]} : vector<32x192xf32> to vector<32x16xf32>
    %191 = vector.extract_strided_slice %125 {offsets = [0, 176], sizes = [32, 16], strides = [1, 1]} : vector<32x192xf32> to vector<32x16xf32>
    %192 = arith.truncf %189 : vector<32x16xf32> to vector<32x16xbf16>
    %193 = arith.truncf %190 : vector<32x16xf32> to vector<32x16xbf16>
    %cst_47 = arith.constant dense<0.000000e+00> : vector<32x32xf32>
    %194 = tpu.matmul %192, %193, %cst_47 {dimension_numbers = #tpu.dot_dimension_numbers<[1], [1], [0], [0], [0, 0, 1, 0], [], []>} : vector<32x16xbf16>, vector<32x16xbf16>, vector<32x32xf32> -> vector<32x32xf32>
    %cst_48 = arith.constant -1.000000e+30 : f32
    %195 = vector.broadcast %cst_48 : f32 to vector<32x32xf32>
    %196 = arith.select %38, %194, %195 : vector<32x32xi1>, vector<32x32xf32>
    %cst_49 = arith.constant dense<0xFF800000> : vector<32xf32>
    %197 = vector.multi_reduction <maximumf>, %196, %cst_49 [1] : vector<32x32xf32> to vector<32xf32>
    %198 = vector.shape_cast %197 : vector<32xf32> to vector<32x1xf32>
    %199 = vector.broadcast %198 : vector<32x1xf32> to vector<32x32xf32>
    %200 = arith.subf %196, %199 : vector<32x32xf32>
    %201 = math.exp %200 : vector<32x32xf32>
    %cst_50 = arith.constant dense<0.000000e+00> : vector<32xf32>
    %202 = vector.multi_reduction <add>, %201, %cst_50 [1] : vector<32x32xf32> to vector<32xf32>
    %203 = vector.shape_cast %202 : vector<32xf32> to vector<32x1xf32>
    %204 = arith.truncf %201 : vector<32x32xf32> to vector<32x32xbf16>
    %205 = arith.truncf %191 : vector<32x16xf32> to vector<32x16xbf16>
    %cst_51 = arith.constant dense<0.000000e+00> : vector<32x16xf32>
    %206 = tpu.matmul %204, %205, %cst_51 {dimension_numbers = #tpu.dot_dimension_numbers<[1], [0], [0], [1], [0, 0, 1, 1], [], []>} : vector<32x32xbf16>, vector<32x16xbf16>, vector<32x16xf32> -> vector<32x16xf32>
    %207 = tpu.reciprocal %203 {approx = true} : vector<32x1xf32> -> vector<32x1xf32>
    %208 = vector.broadcast %207 : vector<32x1xf32> to vector<32x16xf32>
    %209 = arith.mulf %206, %208 : vector<32x16xf32>
    %210 = tpu.concatenate %146, %167, %188, %209 in 1 : vector<32x16xf32>, vector<32x16xf32>, vector<32x16xf32>, vector<32x16xf32> -> vector<32x64xf32>
    %211 = tpu.concatenate %124, %210 in 0 : vector<32x64xf32>, vector<32x64xf32> -> vector<64x64xf32>
    %212 = arith.truncf %211 : vector<64x64xf32> to vector<64x64xbf16>
    %c0_52 = arith.constant 0 : index
    %c0_53 = arith.constant 0 : index
    %213 = vector.load %arg5[%c0_52, %c0_53] : memref<64x64xbf16, #tpu.memory_space<vmem>>, vector<64x64xbf16>
    %cst_54 = arith.constant dense<0.000000e+00> : vector<64x64xf32>
    %214 = tpu.matmul %212, %213, %cst_54 {dimension_numbers = #tpu.dot_dimension_numbers<[1], [0], [0], [1], [0, 0, 1, 1], [], []>} : vector<64x64xbf16>, vector<64x64xbf16>, vector<64x64xf32> -> vector<64x64xf32>
    %215 = vector.broadcast %6 : vector<1x64xf32> to vector<64x64xf32>
    %216 = arith.addf %214, %215 : vector<64x64xf32>
    %217 = arith.addf %0, %216 : vector<64x64xf32>
    %cst_55 = arith.constant dense<0.000000e+00> : vector<64xf32>
    %218 = vector.multi_reduction <add>, %217, %cst_55 [1] : vector<64x64xf32> to vector<64xf32>
    %219 = vector.shape_cast %218 : vector<64xf32> to vector<64x1xf32>
    %cst_56 = arith.constant 6.400000e+01 : f32
    %220 = vector.broadcast %cst_56 : f32 to vector<64x1xf32>
    %221 = arith.divf %219, %220 : vector<64x1xf32>
    %222 = vector.broadcast %221 : vector<64x1xf32> to vector<64x64xf32>
    %223 = arith.subf %217, %222 : vector<64x64xf32>
    %224 = arith.mulf %223, %223 : vector<64x64xf32>
    %cst_57 = arith.constant dense<0.000000e+00> : vector<64xf32>
    %225 = vector.multi_reduction <add>, %224, %cst_57 [1] : vector<64x64xf32> to vector<64xf32>
    %226 = vector.shape_cast %225 : vector<64xf32> to vector<64x1xf32>
    %cst_58 = arith.constant 6.400000e+01 : f32
    %227 = vector.broadcast %cst_58 : f32 to vector<64x1xf32>
    %228 = arith.divf %226, %227 : vector<64x1xf32>
    %229 = vector.broadcast %221 : vector<64x1xf32> to vector<64x64xf32>
    %230 = arith.subf %217, %229 : vector<64x64xf32>
    %cst_59 = arith.constant 9.99999974E-6 : f32
    %231 = vector.broadcast %cst_59 : f32 to vector<64x1xf32>
    %232 = arith.addf %228, %231 : vector<64x1xf32>
    %233 = math.rsqrt %232 : vector<64x1xf32>
    %234 = vector.broadcast %233 : vector<64x1xf32> to vector<64x64xf32>
    %235 = arith.mulf %230, %234 : vector<64x64xf32>
    %236 = vector.broadcast %4 : vector<1x64xf32> to vector<64x64xf32>
    %237 = arith.mulf %235, %236 : vector<64x64xf32>
    %238 = vector.broadcast %5 : vector<1x64xf32> to vector<64x64xf32>
    %239 = arith.addf %237, %238 : vector<64x64xf32>
    %240 = arith.truncf %239 : vector<64x64xf32> to vector<64x64xbf16>
    %c0_60 = arith.constant 0 : index
    %c0_61 = arith.constant 0 : index
    %241 = vector.load %arg6[%c0_60, %c0_61] : memref<64x128xbf16, #tpu.memory_space<vmem>>, vector<64x128xbf16>
    %cst_62 = arith.constant dense<0.000000e+00> : vector<64x128xf32>
    %242 = tpu.matmul %240, %241, %cst_62 {dimension_numbers = #tpu.dot_dimension_numbers<[1], [0], [0], [1], [0, 0, 1, 1], [], []>} : vector<64x64xbf16>, vector<64x128xbf16>, vector<64x128xf32> -> vector<64x128xf32>
    %c0_63 = arith.constant 0 : index
    %c0_64 = arith.constant 0 : index
    %243 = vector.load %arg7[%c0_63, %c0_64] : memref<1x128xf32, #tpu.memory_space<vmem>>, vector<1x128xf32>
    %244 = vector.broadcast %243 : vector<1x128xf32> to vector<64x128xf32>
    %245 = arith.addf %242, %244 : vector<64x128xf32>
    %cst_65 = arith.constant 5.000000e-01 : f32
    %246 = vector.broadcast %cst_65 : f32 to vector<64x128xf32>
    %247 = arith.mulf %246, %245 : vector<64x128xf32>
    %248 = arith.mulf %245, %245 : vector<64x128xf32>
    %249 = arith.mulf %248, %245 : vector<64x128xf32>
    %cst_66 = arith.constant 4.471500e-02 : f32
    %250 = vector.broadcast %cst_66 : f32 to vector<64x128xf32>
    %251 = arith.mulf %250, %249 : vector<64x128xf32>
    %252 = arith.addf %245, %251 : vector<64x128xf32>
    %cst_67 = arith.constant 0.797884583 : f32
    %253 = vector.broadcast %cst_67 : f32 to vector<64x128xf32>
    %254 = arith.mulf %253, %252 : vector<64x128xf32>
    %255 = math.tanh %254 : vector<64x128xf32>
    %cst_68 = arith.constant 1.000000e+00 : f32
    %256 = vector.broadcast %cst_68 : f32 to vector<64x128xf32>
    %257 = arith.addf %256, %255 : vector<64x128xf32>
    %258 = arith.mulf %247, %257 : vector<64x128xf32>
    %259 = arith.truncf %258 : vector<64x128xf32> to vector<64x128xbf16>
    %c0_69 = arith.constant 0 : index
    %c0_70 = arith.constant 0 : index
    %260 = vector.load %arg8[%c0_69, %c0_70] : memref<128x64xbf16, #tpu.memory_space<vmem>>, vector<128x64xbf16>
    %cst_71 = arith.constant dense<0.000000e+00> : vector<64x64xf32>
    %261 = tpu.matmul %259, %260, %cst_71 {dimension_numbers = #tpu.dot_dimension_numbers<[1], [0], [0], [1], [0, 0, 1, 1], [], []>} : vector<64x128xbf16>, vector<128x64xbf16>, vector<64x64xf32> -> vector<64x64xf32>
    %262 = vector.broadcast %7 : vector<1x64xf32> to vector<64x64xf32>
    %263 = arith.addf %261, %262 : vector<64x64xf32>
    %264 = arith.addf %217, %263 : vector<64x64xf32>
    %c0_72 = arith.constant 0 : index
    %c0_73 = arith.constant 0 : index
    %265 = vector.load %arg9[%c0_72, %c0_73] : memref<64x64xf32, #tpu.memory_space<vmem>>, vector<64x64xf32>
    tpu.vector_store %arg9[%c0_72, %c0_73], %264 {strides = array<i32>} : memref<64x64xf32, #tpu.memory_space<vmem>>, vector<64x64xf32>,
    return
  }
  func.func @transform_0(%arg0: i32) -> (i32, i32) {
    %c0_i32 = arith.constant 0 : i32
    %c0_i32_0 = arith.constant 0 : i32
    %c0_i32_1 = arith.constant 0 : i32
    return %c0_i32, %c0_i32_0 : i32, i32
  }
  func.func @transform_1(%arg0: i32) -> (i32, i32) {
    %c0_i32 = arith.constant 0 : i32
    %c0_i32_0 = arith.constant 0 : i32
    %c0_i32_1 = arith.constant 0 : i32
    return %c0_i32, %c0_i32_0 : i32, i32
  }
  func.func @transform_2(%arg0: i32) -> (i32, i32) {
    %c0_i32 = arith.constant 0 : i32
    %c0_i32_0 = arith.constant 0 : i32
    %c0_i32_1 = arith.constant 0 : i32
    return %c0_i32, %c0_i32_0 : i32, i32
  }
  func.func @transform_3(%arg0: i32) -> (i32, i32) {
    %c0_i32 = arith.constant 0 : i32
    %c0_i32_0 = arith.constant 0 : i32
    %c0_i32_1 = arith.constant 0 : i32
    return %c0_i32, %c0_i32_0 : i32, i32
  }
  func.func @transform_4(%arg0: i32) -> (i32, i32) {
    %c0_i32 = arith.constant 0 : i32
    %c0_i32_0 = arith.constant 0 : i32
    %c0_i32_1 = arith.constant 0 : i32
    return %c0_i32, %c0_i32_0 : i32, i32
  }
  func.func @transform_5(%arg0: i32) -> (i32, i32) {
    %c0_i32 = arith.constant 0 : i32
    %c0_i32_0 = arith.constant 0 : i32
    %c0_i32_1 = arith.constant 0 : i32
    return %c0_i32, %c0_i32_0 : i32, i32
  }
  func.func @transform_6(%arg0: i32) -> (i32, i32) {
    %c0_i32 = arith.constant 0 : i32
    %c0_i32_0 = arith.constant 0 : i32
    %c0_i32_1 = arith.constant 0 : i32
    return %c0_i32, %c0_i32_0 : i32, i32
  }
  func.func @transform_7(%arg0: i32) -> (i32, i32) {
    %c0_i32 = arith.constant 0 : i32
    %c0_i32_0 = arith.constant 0 : i32
    %c0_i32_1 = arith.constant 0 : i32
    return %c0_i32, %c0_i32_0 : i32, i32
  }
  func.func @transform_8(%arg0: i32) -> (i32, i32) {
    %c0_i32 = arith.constant 0 : i32
    %c0_i32_0 = arith.constant 0 : i32
    %c0_i32_1 = arith.constant 0 : i32
    return %c0_i32, %c0_i32_0 : i32, i32
  }
}

</mosaic_0001>

<bundles_post_ra>
// kernel: decoder_layer_forward.1
= control target key start
LH: loop header
LB: loop body
LE: loop exit
PB: predicated region body
PF: predicated region fallthrough
CT: control target
= control target key end

     0   :  { %13 = vsyncpa [#allocation3], 0  ;;  %s4226_s0 = inlined_call_operand.vmem [shape: f32[64,64], index: 0, kind: input, shape index: {}]   ;;  %s4227_s1 = inlined_call_operand.vmem [shape: f32[6,64], index: 1, kind: input, shape index: {}]   ;;  %s4228_s2 = inlined_call_operand.hbm [shape: bf16[64,192], index: 2, kind: input, shape index: {}]   ;;  %s4229_s3 = inlined_call_operand.vmem [shape: f32[1,192], index: 3, kind: input, shape index: {}]   ;;  %s4230_s4 = inlined_call_operand.vmem [shape: bf16[64,64], index: 4, kind: input, shape index: {}]   ;;  %s4231_s5 = inlined_call_operand.hbm [shape: bf16[64,128], index: 5, kind: input, shape index: {}]   ;;  %s4232_s6 = inlined_call_operand.vmem [shape: f32[1,128], index: 6, kind: input, shape index: {}]   ;;  %s4233_s7 = inlined_call_operand.vmem [shape: bf16[128,64], index: 7, kind: input, shape index: {}]   ;;  %s4234_s8 = inlined_call_operand.hbm [shape: f32[64,64], index: 8, kind: output, shape index: {}]  }
   0x1   :  { %14 = vsyncpa [#allocation6], 0 }
   0x2   :  { %15 = vsyncpa [#allocation4], 0  ;;  %s3247_s27 = smov [#allocation2]  }
   0x3   :  { %s25_s28 = sshll.u32 %s3247_s27, 4  ;;  %s26_s28 = int_to_ptr.vmem [resolvable:$true] %s25_s28 }
   0x4   :  { %s3189_s29 = scalar_lea.vmem %s26_s28, 1024  ;;  %p3194_p1 = scmp.lt.s32.totalorder %s26_s28, %s26_s28 }
   0x5   :  { %p3190_p0 = scmp.ne.s32.totalorder %s26_s28, %s3189_s29  ;;  %p3195_p2 = scmp.lt.s32.totalorder %s3189_s29, %s3189_s29 }
   0x7   :  { %p3196_p3 = por %p3195_p2, %p3194_p1 }
   0x9   :  { %p3197_p4 = pnand %p3196_p3, %p3190_p0 }
   0xb   :  { %3200 = shalt.err (!%p3197_p4)
}
   0xc   :  { %s3248_s30 = smov 128   ;;  %s3249_s9 = smov 8  }
   0xd   :  { %31 = dma.hbm_to_vmem [thread:$0]  %s4228_s2, 1024, %s26_s28, [#allocation3], %s3248_s30, %s3248_s30, %s3249_s9  }
   0xe   :  { %s3250_s12 = smov [#allocation5]  }
   0xf   :  { %s41_s13 = sshll.u32 %s3250_s12, 4  ;;  %s42_s13 = int_to_ptr.vmem [resolvable:$true] %s41_s13 }
  0x10   :  { %s3209_s14 = scalar_lea.vmem %s42_s13, 512  ;;  %p3214_p6 = scmp.lt.s32.totalorder %s42_s13, %s42_s13 }
  0x11   :  { %p3210_p5 = scmp.ne.s32.totalorder %s42_s13, %s3209_s14  ;;  %p3215_p7 = scmp.lt.s32.totalorder %s3209_s14, %s3209_s14 }
  0x13   :  { %p3216_p8 = por %p3215_p7, %p3214_p6 }
  0x15   :  { %p3217_p9 = pnand %p3216_p8, %p3210_p5 }
  0x17   :  { %3220 = shalt.err (!%p3217_p9)
}
  0x18   :  { %s3251_s15 = smov 64   ;;  %s3252_s16 = smov 4  }
  0x19   :  { %47 = dma.hbm_to_vmem [thread:$0]  %s4231_s5, 512, %s42_s13, [#allocation6], %s3251_s15, %s3251_s15, %s3252_s16  }
  0x1a   :  { %3241 = dma.done.wait [#allocation3], 1024  }
  0x1b   :  { %3242 = vsyncadd [#allocation3], 4294966272 }
  0x1c   :  { %3243 = dma.done.wait [#allocation6], 512  }
  0x1d   :  { %3244 = vsyncadd [#allocation6], 4294966784  ;;  %vm68_vm0 = vcmask 523264   ;;  %v59_v0 = vld [vmem:[%s4226_s0] sm:$0xff]  ;;  %v61_v1 = vld [vmem:[%s4226_s0 + $0x10] sm:$0xff]  ;;  %v3253_v40 = vmov 0   ;;  %v174_v52 = vlaneseq }
  0x1e   :  { %v60_v2 = vld [vmem:[%s4226_s0 + $0x8] sm:$0xff]  ;;  %v69_v3 = vsel %vm68_vm0, %v59_v0, 0.0  ;;  %v75_v4 = vsel %vm68_vm0, %v61_v1, 0.0  ;;  %v62_v5 = vld [vmem:[%s4226_s0 + $0x18] sm:$0xff]  ;;  %v63_v26 = vld [vmem:[%s4226_s0 + $0x20] sm:$0xff]  ;;  %306 = vmatprep.mubr.bf16.mxu0 %v3253_v40  ;;  %vm366_vm1 = vcmask 130048  }
  0x1f   :  { %70 = vadd.xlane.f32.xlu0 %v69_v3  ;;  %76 = vadd.xlane.f32.xlu1 %v75_v4  ;;  %v72_v6 = vsel %vm68_vm0, %v60_v2, 0.0  ;;  %v78_v7 = vsel %vm68_vm0, %v62_v5, 0.0  ;;  %v81_v29 = vsel %vm68_vm0, %v63_v26, 0.0  ;;  %v64_v30 = vld [vmem:[%s4226_s0 + $0x28] sm:$0xff]  ;;  %v65_v31 = vld [vmem:[%s4226_s0 + $0x30] sm:$0xff]  ;;  %v3368_v34 = vld [vmem:[%s4226_s0 + $0x38] sm:$0xff] }
  0x20   :  { %v84_v32 = vsel %vm68_vm0, %v64_v30, 0.0  ;;  %v87_v33 = vsel %vm68_vm0, %v65_v31, 0.0  ;;  %v90_v35 = vsel %vm68_vm0, %v3368_v34, 0.0  ;;  %v2968_v36 = vld [vmem:[#allocation2 + $0x34] ss:$8 sps:$4 sm:$0xff]   ;;  %v3374_v59 = vshrl.u32 %v174_v52, 7 }
  0x21   :  { %v2970_v37 = vld [vmem:[#allocation2 + $0x30] ss:$8 sps:$4 sm:$0xff]   ;;  %v2971_v38 = vld [vmem:[#allocation2 + $0x24] ss:$8 sps:$4 sm:$0xff]   ;;  %282 = vmatprep.subr.bf16.mxu0 %v2968_v36  ;;  %v2973_v39 = vld [vmem:[#allocation2 + $0x20] ss:$8 sps:$4 sm:$0xff]  }
  0x22   :  { %283 = vmatpush1.bf16.msra.mxu0 %v2970_v37  ;;  %v2974_v41 = vld [vmem:[#allocation2 + $0x14] ss:$8 sps:$4 sm:$0xff]   ;;  %v2976_v42 = vld [vmem:[#allocation2 + $0x10] ss:$8 sps:$4 sm:$0xff]   ;;  %v2977_v43 = vld [vmem:[#allocation2 + $0x4] ss:$8 sps:$4 sm:$0xff]  }
  0x23   :  { %73 = vadd.xlane.f32.xlu0 %v72_v6  ;;  %79 = vadd.xlane.f32.xlu1 %v78_v7  ;;  %v2979_v44 = vld [vmem:[#allocation2] ss:$8 sps:$4 sm:$0xff]   ;;  %4237 = vst [vmem:[#allocation11_spill] sm:$0xff] %v3374_v59  ;;  %v176_v3 = vsub.s32 0, %v3374_v59  ;;  %vm432_vm4 = vcmask 261120   ;;  %s3255_s18 = smov 112  }
  0x24   :  { %284 = vmatprep.subr.bf16.mxu0 %v2971_v38  ;;  %v67_v4 = vld [vmem:[%s4227_s1] sm:$0x3f]  ;;  %s3256_s2 = smov 32   ;;  %s3257_s19 = smov 96   ;;  %vm1134_vm7 = vcmask 392192  }
  0x25   :  { %s3258_s20 = smov 16   ;;  %s3259_s21 = smov 80  }
  0x26   :  { %285 = vmatpush1.bf16.msra.mxu0 %v2973_v39 }
  0x27   :  { %286 = vmatprep.subr.bf16.mxu0 %v2974_v41 }
  0x2a   :  { %287 = vmatpush1.bf16.msra.mxu0 %v2976_v42 }
  0x2b   :  { %288 = vmatprep.subr.bf16.mxu0 %v2977_v43 }
  0x2e   :  { %289 = vmatpush1.bf16.msra.mxu0 %v2979_v44 }
  0xa8   :  { %v71_v8 = vpop.xlane.xlu0 %70  ;;  %v77_v9 = vpop.xlane.xlu1 %76 }
  0xa9   :  { %v94_v10 = vmul.f32 0.015625, %v71_v8  ;;  %v96_v11 = vmul.f32 0.015625, %v77_v9 }
  0xab   :  { %v3333_v12 = vsub.f32 %v59_v0, %v94_v10  ;;  %v3335_v13 = vsub.f32 %v61_v1, %v96_v11 }
  0xac   :  { %v74_v14 = vpop.xlane.xlu0 %73  ;;  %v80_v15 = vpop.xlane.xlu1 %79 }
  0xad   :  { %v95_v16 = vmul.f32 0.015625, %v74_v14  ;;  %v97_v17 = vmul.f32 0.015625, %v80_v15  ;;  %v110_v18 = vmul.f32 %v3333_v12, %v3333_v12  ;;  %v112_v19 = vmul.f32 %v3335_v13, %v3335_v13 }
  0xae   :  { %v177_v15 = vrot.slane %v67_v4, %v176_v3 }
  0xaf   :  { %v3341_v20 = vsub.f32 %v60_v2, %v95_v16  ;;  %v3343_v21 = vsub.f32 %v62_v5, %v97_v17  ;;  %v118_v22 = vsel %vm68_vm0, %v110_v18, 0.0  ;;  %v124_v23 = vsel %vm68_vm0, %v112_v19, 0.0 }
  0xb0   :  { %119 = vadd.xlane.f32.xlu0 %v118_v22  ;;  %v188_v16 = vsub.s32 1, %v3374_v59 }
  0xb1   :  { %v111_v24 = vmul.f32 %v3341_v20, %v3341_v20  ;;  %v113_v25 = vmul.f32 %v3343_v21, %v3343_v21 }
  0xb3   :  { %v121_v27 = vsel %vm68_vm0, %v111_v24, 0.0  ;;  %v127_v28 = vsel %vm68_vm0, %v113_v25, 0.0 }
  0xb4   :  { %125 = vadd.xlane.f32.xlu0 %v124_v23  ;;  %122 = vadd.xlane.f32.xlu1 %v121_v27  ;;  %v189_v27 = vrot.slane %v67_v4, %v188_v16 }
  0xb8   :  { %128 = vadd.xlane.f32.xlu1 %v127_v28  ;;  %82 = vadd.xlane.f32.xlu0 %v81_v29 }
  0xbc   :  { %85 = vadd.xlane.f32.xlu1 %v84_v32  ;;  %88 = vadd.xlane.f32.xlu0 %v87_v33 }
  0xc0   :  { %91 = vadd.xlane.f32.xlu1 %v90_v35 }
 0x139   :  { %v120_v45 = vpop.xlane.xlu0 %119 }
 0x13a   :  { %v142_v46 = vmul.f32 0.015625, %v120_v45 }
 0x13c   :  { %v150_v47 = vadd.f32 1e-05, %v142_v46 }
 0x13d   :  { %v123_v48 = vpop.xlane.xlu1 %122  ;;  %v126_v49 = vpop.xlane.xlu0 %125 }
 0x13e   :  { %2996 = vrsqrt.f32 %v150_v47  ;;  %v143_v50 = vmul.f32 0.015625, %v123_v48  ;;  %v144_v51 = vmul.f32 0.015625, %v126_v49 }
 0x140   :  { %v151_v53 = vadd.f32 1e-05, %v143_v50  ;;  %v152_v54 = vadd.f32 1e-05, %v144_v51 }
 0x141   :  { %v129_v55 = vpop.xlane.xlu1 %128  ;;  %v83_v56 = vpop.xlane.xlu0 %82 }
 0x142   :  { %2998 = vrsqrt.f32 %v151_v53  ;;  %v145_v57 = vmul.f32 0.015625, %v129_v55  ;;  %v98_v58 = vmul.f32 0.015625, %v83_v56 }
 0x143   :  { %3000 = vrsqrt.f32 %v152_v54 }
 0x144   :  { %v153_v60 = vadd.f32 1e-05, %v145_v57  ;;  %v3376_v61 = vsub.f32 %v63_v26, %v98_v58 }
 0x145   :  { %v86_v62 = vpop.xlane.xlu1 %85  ;;  %v89_v63 = vpop.xlane.xlu0 %88 }
 0x146   :  { %3002 = vrsqrt.f32 %v153_v60  ;;  %v99_v0 = vmul.f32 0.015625, %v86_v62  ;;  %v114_v1 = vmul.f32 %v3376_v61, %v3376_v61  ;;  %v100_v2 = vmul.f32 0.015625, %v89_v63 }
 0x148   :  { %v107_v5 = vsub.f32 %v64_v30, %v99_v0  ;;  %v130_v6 = vsel %vm68_vm0, %v114_v1, 0.0  ;;  %v108_v7 = vsub.f32 %v65_v31, %v100_v2 }
 0x149   :  { %v92_v8 = vpop.xlane.xlu1 %91  ;;  %131 = vadd.xlane.f32.xlu0 %v130_v6 }
 0x14a   :  { %v115_v9 = vmul.f32 %v107_v5, %v107_v5  ;;  %v101_v10 = vmul.f32 0.015625, %v92_v8  ;;  %v116_v11 = vmul.f32 %v108_v7, %v108_v7 }
 0x14b   :  { %v2997_v14 = vpop.eup %2996 }
 0x14c   :  { %v166_v17 = vmul.f32 %v2997_v14, %v3333_v12  ;;  %v133_v18 = vsel %vm68_vm0, %v115_v9, 0.0  ;;  %v109_v19 = vsub.f32 %v3368_v34, %v101_v10  ;;  %v136_v22 = vsel %vm68_vm0, %v116_v11, 0.0 }
 0x14d   :  { %134 = vadd.xlane.f32.xlu1 %v133_v18  ;;  %137 = vadd.xlane.f32.xlu0 %v136_v22 }
 0x14e   :  { %v117_v23 = vmul.f32 %v109_v19, %v109_v19  ;;  %v178_v26 = vmul.f32 %v177_v15, %v166_v17 }
 0x14f   :  { %v2999_v24 = vpop.eup %2998 }
 0x150   :  { %v167_v25 = vmul.f32 %v2999_v24, %v3341_v20  ;;  %v139_v28 = vsel %vm68_vm0, %v117_v23, 0.0  ;;  %v3001_v29 = vpop.eup %3000  ;;  %v190_v31 = vadd.f32 %v189_v27, %v178_v26 }
 0x151   :  { %140 = vadd.xlane.f32.xlu1 %v139_v28  ;;  %v168_v33 = vmul.f32 %v3001_v29, %v3335_v13 }
 0x152   :  { %v179_v12 = vmul.f32 %v177_v15, %v167_v25 }
 0x153   :  { %v3003_v30 = vpop.eup %3002  ;;  %v180_v20 = vmul.f32 %v177_v15, %v168_v33 }
 0x154   :  { %v191_v32 = vadd.f32 %v189_v27, %v179_v12  ;;  %v169_v34 = vmul.f32 %v3003_v30, %v3343_v21 }
 0x155   :  { %v192_v38 = vadd.f32 %v189_v27, %v180_v20 }
 0x156   :  { %v198_v35 = vpack.c.bf16 %v191_v32, %v190_v31  ;;  %v181_v36 = vmul.f32 %v177_v15, %v169_v34 }
 0x158   :  { %2541 = vmatmul.mubr.msk.bf16.vlgmr.msra.gmra.mxu0 %vm68_vm0, %v198_v35  ;;  %v193_v37 = vadd.f32 %v189_v27, %v181_v36 }
 0x159   :  { %316 = vmatprep.mubr.bf16.mxu0 %v3253_v40 }
 0x15a   :  { %v199_v39 = vpack.c.bf16 %v193_v37, %v192_v38 }
 0x160   :  { %2542 = vmatmul.mubr.msk.bf16.gmra.mxu0 %vm68_vm0, %v199_v39 }
 0x161   :  { %326 = vmatprep.mubr.bf16.mxu0 %v3253_v40 }
 0x1d2   :  { %v132_v41 = vpop.xlane.xlu0 %131 }
 0x1d3   :  { %v146_v42 = vmul.f32 0.015625, %v132_v41 }
 0x1d5   :  { %v154_v43 = vadd.f32 1e-05, %v146_v42 }
 0x1d6   :  { %v135_v13 = vpop.xlane.xlu1 %134  ;;  %v138_v44 = vpop.xlane.xlu0 %137 }
 0x1d7   :  { %v147_v21 = vmul.f32 0.015625, %v135_v13  ;;  %3004 = vrsqrt.f32 %v154_v43  ;;  %v148_v45 = vmul.f32 0.015625, %v138_v44 }
 0x1d9   :  { %v155_v46 = vadd.f32 1e-05, %v147_v21  ;;  %v156_v47 = vadd.f32 1e-05, %v148_v45 }
 0x1da   :  { %v141_v48 = vpop.xlane.xlu1 %140 }
 0x1db   :  { %3006 = vrsqrt.f32 %v155_v46  ;;  %v149_v49 = vmul.f32 0.015625, %v141_v48 }
 0x1dc   :  { %3008 = vrsqrt.f32 %v156_v47 }
 0x1dd   :  { %v157_v50 = vadd.f32 1e-05, %v149_v49 }
 0x1df   :  { %3010 = vrsqrt.f32 %v157_v50 }
 0x1e4   :  { %v3005_v51 = vpop.eup %3004 }
 0x1e5   :  { %v170_v53 = vmul.f32 %v3005_v51, %v3376_v61  ;;  %v353_v51 = vand.u32 127, %v174_v52 }
 0x1e7   :  { %v182_v54 = vmul.f32 %v177_v15, %v170_v53  ;;  %v351_v53 = vadd.s32 24, %v3374_v59  ;;  %vm3458_vm2 = vcmp.le.s32.totalorder %v353_v51, %v3374_v59 }
 0x1e8   :  { %v3007_v55 = vpop.eup %3006 }
 0x1e9   :  { %v3009_v56 = vpop.eup %3008  ;;  %v171_v57 = vmul.f32 %v3007_v55, %v107_v5  ;;  %v194_v62 = vadd.f32 %v189_v27, %v182_v54  ;;  %v210_v5 = vld [vmem:[%s4229_s3] sm:$0x3]  ;;  %vm3464_vm3 = vcmp.le.s32.totalorder %v353_v51, %v351_v53  ;;  %s3254_s3 = smov 48  }
 0x1ea   :  { %v172_v58 = vmul.f32 %v3009_v56, %v108_v7  ;;  %v215_v10 = vrot.slane %v210_v5, %v176_v3  ;;  %v3419_v3 = vrot.slane %v210_v5, %v188_v16  ;;  %v349_v56 = vadd.s32 8, %v3374_v59 }
 0x1eb   :  { %v183_v60 = vmul.f32 %v177_v15, %v171_v57  ;;  %v350_v57 = vadd.s32 16, %v3374_v59 }
 0x1ec   :  { %v3011_v63 = vpop.eup %3010  ;;  %v184_v2 = vmul.f32 %v177_v15, %v172_v58  ;;  %vm3471_vm5 = vcmp.le.s32.totalorder %v353_v51, %v349_v56 }
 0x1ed   :  { %v195_v0 = vadd.f32 %v189_v27, %v183_v60  ;;  %v173_v1 = vmul.f32 %v3011_v63, %v109_v19  ;;  %vm3477_vm6 = vcmp.le.s32.totalorder %v353_v51, %v350_v57 }
 0x1ee   :  { %v196_v8 = vadd.f32 %v189_v27, %v184_v2 }
 0x1ef   :  { %v200_v4 = vpack.c.bf16 %v195_v0, %v194_v62  ;;  %v185_v6 = vmul.f32 %v177_v15, %v173_v1 }
 0x1f1   :  { %2543 = vmatmul.mubr.msk.bf16.gmra.mxu0 %vm68_vm0, %v200_v4  ;;  %v197_v9 = vadd.f32 %v189_v27, %v185_v6 }
 0x1f2   :  { %336 = vmatprep.mubr.bf16.mxu0 %v3253_v40 }
 0x1f3   :  { %v201_v61 = vpack.c.bf16 %v197_v9, %v196_v8 }
 0x1f9   :  { %2544 = vmatmul.mubr.msk.bf16.gmra.mxu0 %vm68_vm0, %v201_v61 }
 0x218   :  { %v308_v7 = vpop.f32.mrf.mxu0 }
 0x219   :  { %v309_v15 = vadd.f32 %v308_v7, %v215_v10 }
 0x21a   :  { %v310_v11 = vpop.f32.mrf.mxu0 }
 0x21b   :  { %v311_v30 = vadd.f32 %v310_v11, %v3419_v3 }
 0x21c   :  { %v312_v14 = vpop.f32.mrf.mxu0 }
 0x21d   :  { %v313_v17 = vadd.f32 %v312_v14, %v215_v10 }
 0x21e   :  { %v314_v18 = vpop.f32.mrf.mxu0 }
 0x21f   :  { %v3411_v19 = vpack.c.bf16 %v313_v17, %v309_v15  ;;  %v315_v27 = vadd.f32 %v314_v18, %v3419_v3 }
 0x220   :  { %v318_v40 = vpop.f32.mrf.mxu0 }
 0x221   :  { %362 = vrot.lane.b32.xlu1 %v3411_v19, %s3251_s15  ;;  %2698 = vmatprep.mubr.msk.bf16.mxu0 %vm366_vm1, %v3411_v19  ;;  %v319_v24 = vadd.f32 %v318_v40, %v215_v10  ;;  %v3431_v16 = vpack.c.bf16 %v315_v27, %v311_v30 }
 0x222   :  { %v320_v22 = vpop.f32.mrf.mxu0 }
 0x223   :  { %v321_v28 = vadd.f32 %v320_v22, %v3419_v3 }
 0x224   :  { %v322_v23 = vpop.f32.mrf.mxu0 }
 0x225   :  { %v323_v25 = vadd.f32 %v322_v23, %v215_v10 }
 0x226   :  { %v324_v26 = vpop.f32.mrf.mxu0 }
 0x227   :  { %v3423_v29 = vpack.c.bf16 %v323_v25, %v319_v24  ;;  %v325_v12 = vadd.f32 %v324_v26, %v3419_v3 }
 0x229   :  { %v3427_v31 = vpack.c.bf16 %v325_v12, %v321_v28  ;;  %364 = vrot.lane.b32.xlu0 %v3423_v29, %s3251_s15 }
 0x22b   :  { %2702 = vmatprep.subr.bf16.mxu1 %v3427_v31 }
 0x22c   :  { %2703 = vmatpush3.bf16.msra.mxu1 %v3427_v31 }
 0x22d   :  { %2704 = vmatprep.subr.bf16.mxu1 %v3431_v16 }
 0x230   :  { %2705 = vmatpush3.bf16.msra.mxu1 %v3431_v16 }
 0x293   :  { %v363_v34 = vpop.permute.xlu1 %362 }
 0x294   :  { %v374_v35 = vsel %vm366_vm1, %v363_v34, 0 }
 0x29b   :  { %v365_v32 = vpop.permute.xlu0 %364 }
 0x29c   :  { %2878 = vmatprep.subr.msk.bf16.mxu0 %vm366_vm1, %v365_v32  ;;  %v377_v33 = vsel %vm366_vm1, %v365_v32, 0 }
 0x29d   :  { %2695 = vmatpush3.bf16.xpose.msra.mxu0 %v377_v33 }
 0x29e   :  { %2879 = vmatprep.subr.msk.bf16.mxu0 %vm366_vm1, %v363_v34 }
 0x2a5   :  { %2697 = vmatpush3.bf16.xpose.msra.mxu0 %v374_v35 }
 0x2ac   :  { %2699 = vmatmul.mubr.msk.bf16.vlgmr.msra.gmra.mxu0 %vm366_vm1, %v3423_v29 }
 0x2b1   :  { %v328_v36 = vpop.f32.mrf.mxu0 }
 0x2b2   :  { %v329_v37 = vadd.f32 %v328_v36, %v215_v10 }
 0x2b3   :  { %v330_v20 = vpop.f32.mrf.mxu0 }
 0x2b4   :  { %v331_v39 = vadd.f32 %v330_v20, %v3419_v3 }
 0x2b5   :  { %v332_v38 = vpop.f32.mrf.mxu0 }
 0x2b6   :  { %v333_v41 = vadd.f32 %v332_v38, %v215_v10 }
 0x2b7   :  { %v334_v42 = vpop.f32.mrf.mxu0 }
 0x2b8   :  { %v3444_v43 = vpack.c.bf16 %v333_v41, %v329_v37  ;;  %v335_v13 = vadd.f32 %v334_v42, %v3419_v3 }
 0x2b9   :  { %v338_v44 = vpop.f32.mrf.mxu0 }
 0x2ba   :  { %v3447_v21 = vpack.c.bf16 %v335_v13, %v331_v39  ;;  %v339_v46 = vadd.f32 %v338_v44, %v215_v10 }
 0x2bb   :  { %v3449_v45 = vpop.f32.mrf.mxu0 }
 0x2bd   :  { %v342_v47 = vpop.f32.mrf.mxu0 }
 0x2be   :  { %v343_v48 = vadd.f32 %v342_v47, %v215_v10 }
 0x2bf   :  { %v3453_v50 = vpop.f32.mrf.mxu0 }
 0x2c0   :  { %v3451_v49 = vpack.c.bf16 %v343_v48, %v339_v46 }
 0x36c   :  { %v2700_v54 = vpop.f32.mrf.mxu0 }
 0x36d   :  { %v430_v61 = vsel %vm3477_vm6, %v2700_v54, -1e+30 }
 0x36e   :  { %v413_v58 = vpop.f32.mrf.mxu0  ;;  %v439_v5 = vsel %vm432_vm4, %v430_v61, -inf }
 0x36f   :  { %v428_v52 = vsel %vm3458_vm2, %v413_v58, -1e+30 }
 0x370   :  { %v2701_v62 = vpop.f32.mrf.mxu0  ;;  %v433_v63 = vsel %vm432_vm4, %v428_v52, -inf }
 0x371   :  { %v431_v1 = vsel %vm3464_vm3, %v2701_v62, -1e+30  ;;  %434 = vmax.xlane.f32.xlu1 %v433_v63 }
 0x372   :  { %v416_v4 = vpop.f32.mrf.mxu0  ;;  %v442_v8 = vsel %vm432_vm4, %v431_v1, -inf }
 0x373   :  { %v429_v6 = vsel %vm3471_vm5, %v416_v4, -1e+30 }
 0x374   :  { %v436_v9 = vsel %vm432_vm4, %v429_v6, -inf }
 0x375   :  { %443 = vmax.xlane.f32.xlu1 %v442_v8  ;;  %437 = vmax.xlane.f32.xlu0 %v436_v9 }
 0x379   :  { %440 = vmax.xlane.f32.xlu0 %v439_v5 }
 0x386   :  { %540 = vrot.lane.b32.xlu1 %v3411_v19, %s3254_s3 }
 0x38a   :  { %536 = vrot.lane.b32.xlu1 %v3411_v19, %s3255_s18 }
 0x38e   :  { %724 = vrot.lane.b32.xlu1 %v3423_v29, %s3256_s2 }
 0x38f   :  { %542 = vrot.lane.b32.xlu0 %v3423_v29, %s3254_s3 }
 0x392   :  { %722 = vrot.lane.b32.xlu1 %v3411_v19, %s3256_s2 }
 0x393   :  { %538 = vrot.lane.b32.xlu0 %v3423_v29, %s3255_s18 }
 0x396   :  { %720 = vrot.lane.b32.xlu1 %v3423_v29, %s3257_s19 }
 0x397   :  { %718 = vrot.lane.b32.xlu0 %v3411_v19, %s3257_s19 }
 0x3fa   :  { %v435_v7 = vpop.xlane.xlu1 %434 }
 0x3fb   :  { %v445_v10 = vsub.f32 %v428_v52, %v435_v7 }
 0x3fd   :  { %v449_v15 = vmul.f32 1.442695, %v445_v10 }
 0x3fe   :  { %v444_v11 = vpop.xlane.xlu1 %443  ;;  %v438_v14 = vpop.xlane.xlu0 %437 }
 0x3ff   :  { %v448_v17 = vsub.f32 %v431_v1, %v444_v11  ;;  %v446_v18 = vsub.f32 %v429_v6, %v438_v14  ;;  %3012 = vpow2.f32 %v449_v15 }
 0x401   :  { %v451_v40 = vmul.f32 1.442695, %v446_v18  ;;  %v455_v22 = vmul.f32 1.442695, %v448_v17 }
 0x402   :  { %v441_v23 = vpop.xlane.xlu0 %440  ;;  %v541_v12 = vpop.permute.xlu1 %540 }
 0x403   :  { %v447_v24 = vsub.f32 %v430_v61, %v441_v23  ;;  %3014 = vpow2.f32 %v451_v40  ;;  %v551_v20 = vsel %vm366_vm1, %v541_v12, 0 }
 0x404   :  { %3016 = vpow2.f32 %v455_v22 }
 0x405   :  { %v453_v25 = vmul.f32 1.442695, %v447_v24 }
 0x406   :  { %v543_v26 = vpop.permute.xlu0 %542  ;;  %v537_v35 = vpop.permute.xlu1 %536 }
 0x407   :  { %3018 = vpow2.f32 %v453_v25  ;;  %2880 = vmatprep.subr.msk.bf16.mxu1 %vm366_vm1, %v543_v26  ;;  %v554_v36 = vsel %vm366_vm1, %v543_v26, 0 }
 0x40a   :  { %v725_v37 = vpop.permute.xlu1 %724  ;;  %v539_v38 = vpop.permute.xlu0 %538 }
 0x40b   :  { %v736_v41 = vsel %vm366_vm1, %v725_v37, 0 }
 0x40c   :  { %v3505_v27 = vpop.eup %3012 }
 0x40e   :  { %v719_v39 = vpop.permute.xlu0 %718  ;;  %v723_v42 = vpop.permute.xlu1 %722 }
 0x40f   :  { %v733_v13 = vsel %vm366_vm1, %v723_v42, 0 }
 0x410   :  { %v3507_v28 = vpop.eup %3014 }
 0x411   :  { %v469_v30 = vpack.c.bf16 %v3507_v28, %v3505_v27  ;;  %v3511_v32 = vpop.eup %3016 }
 0x412   :  { %v721_v44 = vpop.permute.xlu1 %720 }
 0x413   :  { %2706 = vmatprep.mubr.msk.bf16.mxu1 %vm432_vm4, %v469_v30 }
 0x414   :  { %v3513_v33 = vpop.eup %3018 }
 0x415   :  { %v470_v34 = vpack.c.bf16 %v3511_v32, %v3513_v33 }
 0x417   :  { %2707 = vmatmul.mubr.msk.bf16.vlgmr.msra.gmra.mxu1 %vm432_vm4, %v470_v34 }
 0x418   :  { %2711 = vmatpush3.bf16.xpose.msra.mxu1 %v554_v36  ;;  %2714 = vmatprep.mubr.msk.bf16.mxu1 %vm366_vm1, %v537_v35 }
 0x419   :  { %2881 = vmatprep.subr.msk.bf16.mxu1 %vm366_vm1, %v541_v12 }
 0x420   :  { %2713 = vmatpush3.bf16.xpose.msra.mxu1 %v551_v20 }
 0x421   :  { %2882 = vmatprep.subr.msk.bf16.mxu1 %vm366_vm1, %v725_v37 }
 0x427   :  { %2715 = vmatmul.mubr.msk.bf16.vlgmr.msra.gmra.mxu1 %vm366_vm1, %v539_v38 }
 0x428   :  { %2727 = vmatpush3.bf16.xpose.msra.mxu1 %v736_v41  ;;  %2730 = vmatprep.mubr.msk.bf16.mxu1 %vm366_vm1, %v719_v39 }
 0x429   :  { %2883 = vmatprep.subr.msk.bf16.mxu1 %vm366_vm1, %v723_v42 }
 0x430   :  { %2729 = vmatpush3.bf16.xpose.msra.mxu1 %v733_v13 }
 0x437   :  { %2731 = vmatmul.mubr.msk.bf16.vlgmr.msra.gmra.mxu1 %vm366_vm1, %v721_v44 }
 0x4d7   :  { %v3530_v46 = vpop.f32.mrf.mxu1 }
 0x4d8   :  { %4246 = vst [vmem:[#allocation12_spill] sm:$0xff] %v3530_v46 }
 0x4d9   :  { %v3532_v47 = vpop.f32.mrf.mxu1 }
 0x4da   :  { %4247 = vst [vmem:[#allocation13_spill] sm:$0xff] %v3532_v47 }
 0x4db   :  { %v3534_v48 = vpop.f32.mrf.mxu1 }
 0x4dc   :  { %4248 = vst [vmem:[#allocation14_spill] sm:$0xff] %v3534_v48 }
 0x4dd   :  { %v3536_v51 = vpop.f32.mrf.mxu1 }
 0x4de   :  { %4249 = vst [vmem:[#allocation15_spill] sm:$0xff] %v3536_v51 }
 0x4e7   :  { %v2716_v53 = vpop.f32.mrf.mxu1 }
 0x4e8   :  { %v607_v54 = vsel %vm3477_vm6, %v2716_v53, -1e+30 }
 0x4e9   :  { %v590_v56 = vpop.f32.mrf.mxu1  ;;  %v615_v57 = vsel %vm432_vm4, %v607_v54, -inf }
 0x4ea   :  { %v605_v58 = vsel %vm3458_vm2, %v590_v56, -1e+30  ;;  %616 = vmax.xlane.f32.xlu0 %v615_v57 }
 0x4eb   :  { %v2717_v52 = vpop.f32.mrf.mxu1  ;;  %v609_v63 = vsel %vm432_vm4, %v605_v58, -inf }
 0x4ec   :  { %v608_v1 = vsel %vm3464_vm3, %v2717_v52, -1e+30 }
 0x4ed   :  { %v593_v62 = vpop.f32.mrf.mxu1  ;;  %v618_v8 = vsel %vm432_vm4, %v608_v1, -inf }
 0x4ee   :  { %v606_v4 = vsel %vm3471_vm5, %v593_v62, -1e+30  ;;  %610 = vmax.xlane.f32.xlu0 %v609_v63 }
 0x4ef   :  { %v612_v6 = vsel %vm432_vm4, %v606_v4, -inf }
 0x4f0   :  { %613 = vmax.xlane.f32.xlu1 %v612_v6 }
 0x4f2   :  { %619 = vmax.xlane.f32.xlu0 %v618_v8 }
 0x4f7   :  { %v2732_v9 = vpop.f32.mrf.mxu1 }
 0x4f8   :  { %v3552_v61 = vsel %vm3477_vm6, %v2732_v9, -1e+30 }
 0x4f9   :  { %v772_v5 = vpop.f32.mrf.mxu1  ;;  %v797_v7 = vsel %vm432_vm4, %v3552_v61, -inf }
 0x4fa   :  { %v787_v10 = vsel %vm3458_vm2, %v772_v5, -1e+30  ;;  %798 = vmax.xlane.f32.xlu0 %v797_v7 }
 0x4fb   :  { %v791_v11 = vsel %vm432_vm4, %v787_v10, -inf  ;;  %v2733_v14 = vpop.f32.mrf.mxu1 }
 0x4fc   :  { %v790_v15 = vsel %vm3464_vm3, %v2733_v14, -1e+30 }
 0x4fd   :  { %v775_v17 = vpop.f32.mrf.mxu1  ;;  %v800_v18 = vsel %vm432_vm4, %v790_v15, -inf }
 0x4fe   :  { %792 = vmax.xlane.f32.xlu0 %v791_v11  ;;  %v788_v40 = vsel %vm3471_vm5, %v775_v17, -1e+30 }
 0x4ff   :  { %v794_v22 = vsel %vm432_vm4, %v788_v40, -inf }
 0x501   :  { %649 = vrot.lane.b32.xlu1 %v3431_v16, %s3255_s18 }
 0x505   :  { %831 = vrot.lane.b32.xlu1 %v3427_v31, %s3257_s19 }
 0x514   :  { %651 = vrot.lane.b32.xlu0 %v3427_v31, %s3255_s18 }
 0x518   :  { %904 = vrot.lane.b32.xlu0 %v3423_v29, %s3258_s20 }
 0x51c   :  { %898 = vrot.lane.b32.xlu0 %v3411_v19, %s3259_s21 }
 0x529   :  { %801 = vmax.xlane.f32.xlu1 %v800_v18 }
 0x52d   :  { %795 = vmax.xlane.f32.xlu1 %v794_v22 }
 0x53e   :  { %829 = vrot.lane.b32.xlu1 %v3431_v16, %s3257_s19 }
 0x542   :  { %902 = vrot.lane.b32.xlu1 %v3411_v19, %s3258_s20 }
 0x546   :  { %900 = vrot.lane.b32.xlu1 %v3423_v29, %s3259_s21 }
 0x54a   :  { %1009 = vrot.lane.b32.xlu1 %v3431_v16, %s3259_s21 }
 0x573   :  { %v617_v23 = vpop.xlane.xlu0 %616 }
 0x574   :  { %v623_v35 = vsub.f32 %v607_v54, %v617_v23  ;;  %v341_v23 = vadd.f32 %v3449_v45, %v3419_v3 }
 0x576   :  { %v629_v19 = vmul.f32 1.442695, %v623_v35 }
 0x577   :  { %v611_v24 = vpop.xlane.xlu0 %610 }
 0x578   :  { %v621_v25 = vsub.f32 %v605_v58, %v611_v24  ;;  %v345_v24 = vadd.f32 %v3453_v50, %v3419_v3 }
 0x579   :  { %v614_v26 = vpop.xlane.xlu1 %613 }
 0x57a   :  { %v625_v12 = vmul.f32 1.442695, %v621_v25  ;;  %v622_v30 = vsub.f32 %v606_v4, %v614_v26  ;;  %v3620_v25 = vpack.c.bf16 %v345_v24, %v341_v23 }
 0x57b   :  { %v620_v34 = vpop.xlane.xlu0 %619 }
 0x57c   :  { %v627_v36 = vmul.f32 1.442695, %v622_v30  ;;  %v624_v20 = vsub.f32 %v608_v1, %v620_v34  ;;  %3020 = vpow2.f32 %v625_v12 }
 0x57d   :  { %v650_v41 = vpop.permute.xlu1 %649 }
 0x57e   :  { %3022 = vpow2.f32 %v627_v36  ;;  %v631_v37 = vmul.f32 1.442695, %v624_v20 }
 0x580   :  { %3024 = vpow2.f32 %v631_v37 }
 0x581   :  { %3026 = vpow2.f32 %v629_v19  ;;  %v832_v54 = vpop.permute.xlu1 %831 }
 0x583   :  { %v799_v38 = vpop.xlane.xlu0 %798 }
 0x584   :  { %v805_v62 = vsub.f32 %v3552_v61, %v799_v38 }
 0x586   :  { %v811_v8 = vmul.f32 1.442695, %v805_v62 }
 0x587   :  { %v793_v29 = vpop.xlane.xlu0 %792 }
 0x588   :  { %v803_v57 = vsub.f32 %v787_v10, %v793_v29 }
 0x589   :  { %v3583_v39 = vpop.eup %3020 }
 0x58a   :  { %v807_v63 = vmul.f32 1.442695, %v803_v57  ;;  %v633_v60 = vsel %vm432_vm4, %v3583_v39, 0.0 }
 0x58b   :  { %v3585_v16 = vpop.eup %3022  ;;  %v652_v42 = vpop.permute.xlu0 %651 }
 0x58c   :  { %2718 = vmatprep.subr.bf16.mxu0 %v652_v42  ;;  %v645_v13 = vpack.c.bf16 %v3585_v16, %v3583_v39  ;;  %3028 = vpow2.f32 %v807_v63  ;;  %v636_v0 = vsel %vm432_vm4, %v3585_v16, 0.0 }
 0x58d   :  { %2719 = vmatpush3.bf16.msra.mxu0 %v652_v42  ;;  %v3590_v44 = vpop.eup %3024 }
 0x58e   :  { %2720 = vmatprep.subr.bf16.mxu0 %v650_v41  ;;  %2722 = vmatprep.mubr.msk.bf16.mxu0 %vm432_vm4, %v645_v13  ;;  %v3592_v53 = vpop.eup %3026 }
 0x58f   :  { %v646_v56 = vpack.c.bf16 %v3590_v44, %v3592_v53  ;;  %v905_v7 = vpop.permute.xlu0 %904 }
 0x591   :  { %2721 = vmatpush3.bf16.msra.mxu0 %v650_v41 }
 0x592   :  { %2734 = vmatprep.subr.bf16.mxu0 %v832_v54 }
 0x593   :  { %v899_v18 = vpop.permute.xlu0 %898 }
 0x594   :  { %2723 = vmatmul.mubr.msk.bf16.vlgmr.msra.gmra.mxu0 %vm432_vm4, %v646_v56 }
 0x595   :  { %2735 = vmatpush3.bf16.msra.mxu0 %v832_v54 }
 0x599   :  { %v3599_v10 = vpop.eup %3028 }
 0x59a   :  { %v815_v39 = vsel %vm432_vm4, %v3599_v10, 0.0 }
 0x5b2   :  { %v802_v58 = vpop.xlane.xlu1 %801 }
 0x5b3   :  { %v806_v52 = vsub.f32 %v790_v15, %v802_v58 }
 0x5b5   :  { %v813_v1 = vmul.f32 1.442695, %v806_v52 }
 0x5b6   :  { %v796_v4 = vpop.xlane.xlu1 %795 }
 0x5b7   :  { %v804_v6 = vsub.f32 %v788_v40, %v796_v4  ;;  %3030 = vpow2.f32 %v813_v1  ;;  %v916_v40 = vsel %vm366_vm1, %v905_v7, 0 }
 0x5b9   :  { %v809_v9 = vmul.f32 1.442695, %v804_v6 }
 0x5ba   :  { %v830_v5 = vpop.permute.xlu1 %829 }
 0x5bb   :  { %3032 = vpow2.f32 %v809_v9  ;;  %2736 = vmatprep.subr.bf16.mxu0 %v830_v5 }
 0x5bc   :  { %3034 = vpow2.f32 %v811_v8  ;;  %2737 = vmatpush3.bf16.msra.mxu0 %v830_v5 }
 0x5bd   :  { %2884 = vmatprep.subr.msk.bf16.mxu0 %vm366_vm1, %v905_v7 }
 0x5be   :  { %v903_v22 = vpop.permute.xlu1 %902 }
 0x5bf   :  { %v913_v26 = vsel %vm366_vm1, %v903_v22, 0 }
 0x5c2   :  { %v901_v12 = vpop.permute.xlu1 %900 }
 0x5c4   :  { %v3601_v11 = vpop.eup %3030 }
 0x5c5   :  { %v824_v16 = vsel %vm432_vm4, %v3601_v11, 0.0 }
 0x5c6   :  { %v1010_v63 = vpop.permute.xlu1 %1009 }
 0x5c8   :  { %v3603_v61 = vpop.eup %3032 }
 0x5c9   :  { %v3605_v14 = vpop.eup %3034  ;;  %v827_v15 = vpack.c.bf16 %v3603_v61, %v3599_v10 }
 0x5ca   :  { %v828_v17 = vpack.c.bf16 %v3601_v11, %v3605_v14 }
 0x5cb   :  { %2738 = vmatprep.mubr.msk.bf16.mxu0 %vm432_vm4, %v827_v15 }
 0x5cc   :  { %2739 = vmatmul.mubr.msk.bf16.vlgmr.msra.gmra.mxu0 %vm432_vm4, %v828_v17 }
 0x5cd   :  { %2743 = vmatpush3.bf16.xpose.msra.mxu0 %v916_v40  ;;  %2746 = vmatprep.mubr.msk.bf16.mxu0 %vm366_vm1, %v899_v18 }
 0x5ce   :  { %2885 = vmatprep.subr.msk.bf16.mxu0 %vm366_vm1, %v903_v22 }
 0x5d5   :  { %2745 = vmatpush3.bf16.xpose.msra.mxu0 %v913_v26 }
 0x5d6   :  { %2766 = vmatprep.subr.bf16.mxu0 %v3620_v25 }
 0x5dc   :  { %2747 = vmatmul.mubr.msk.bf16.vlgmr.msra.gmra.mxu0 %vm366_vm1, %v901_v12 }
 0x5dd   :  { %2767 = vmatpush3.bf16.msra.mxu0 %v3620_v25 }
 0x5de   :  { %2768 = vmatprep.subr.bf16.mxu0 %v3447_v21 }
 0x5e1   :  { %2769 = vmatpush3.bf16.msra.mxu0 %v3447_v21 }
 0x654   :  { %v3628_v45 = vpop.f32.mrf.mxu0 }
 0x656   :  { %v3630_v30 = vpop.f32.mrf.mxu0 }
 0x658   :  { %v3632_v3 = vpop.f32.mrf.mxu0 }
 0x65a   :  { %v3634_v50 = vpop.f32.mrf.mxu0 }
 0x68c   :  { %v3636_v34 = vpop.f32.mrf.mxu0 }
 0x68e   :  { %v3638_v35 = vpop.f32.mrf.mxu0 }
 0x690   :  { %v3640_v36 = vpop.f32.mrf.mxu0 }
 0x692   :  { %v3642_v20 = vpop.f32.mrf.mxu0 }
 0x69c   :  { %v2748_v37 = vpop.f32.mrf.mxu0 }
 0x69d   :  { %v969_v19 = vsel %vm3477_vm6, %v2748_v37, -1e+30 }
 0x69e   :  { %v952_v38 = vpop.f32.mrf.mxu0  ;;  %v977_v29 = vsel %vm432_vm4, %v969_v19, -inf }
 0x69f   :  { %v967_v41 = vsel %vm3458_vm2, %v952_v38, -1e+30  ;;  %978 = vmax.xlane.f32.xlu0 %v977_v29 }
 0x6a0   :  { %v2749_v42 = vpop.f32.mrf.mxu0  ;;  %v971_v54 = vsel %vm432_vm4, %v967_v41, -inf }
 0x6a1   :  { %v970_v56 = vsel %vm3464_vm3, %v2749_v42, -1e+30 }
 0x6a2   :  { %v955_v13 = vpop.f32.mrf.mxu0  ;;  %v980_v52 = vsel %vm432_vm4, %v970_v56, -inf }
 0x6a3   :  { %v968_v57 = vsel %vm3471_vm5, %v955_v13, -1e+30  ;;  %972 = vmax.xlane.f32.xlu0 %v971_v54 }
 0x6a4   :  { %v974_v58 = vsel %vm432_vm4, %v968_v57, -inf }
 0x6a5   :  { %975 = vmax.xlane.f32.xlu1 %v974_v58 }
 0x6a7   :  { %981 = vmax.xlane.f32.xlu0 %v980_v52 }
 0x6b6   :  { %1145 = vrot.lane.b32.xlu1 %v3451_v49, %s3251_s15 }
 0x6ba   :  { %1143 = vrot.lane.b32.xlu1 %v3444_v43, %s3251_s15 }
 0x6bd   :  { %1011 = vrot.lane.b32.xlu0 %v3427_v31, %s3259_s21 }
 0x728   :  { %v979_v62 = vpop.xlane.xlu0 %978 }
 0x729   :  { %v985_v1 = vsub.f32 %v969_v19, %v979_v62 }
 0x72b   :  { %v991_v7 = vmul.f32 1.442695, %v985_v1 }
 0x72c   :  { %v973_v4 = vpop.xlane.xlu0 %972 }
 0x72d   :  { %v983_v6 = vsub.f32 %v967_v41, %v973_v4 }
 0x72e   :  { %v976_v8 = vpop.xlane.xlu1 %975 }
 0x72f   :  { %v987_v9 = vmul.f32 1.442695, %v983_v6  ;;  %v984_v5 = vsub.f32 %v968_v57, %v976_v8 }
 0x730   :  { %v982_v15 = vpop.xlane.xlu0 %981 }
 0x731   :  { %v989_v17 = vmul.f32 1.442695, %v984_v5  ;;  %v986_v18 = vsub.f32 %v970_v56, %v982_v15  ;;  %3036 = vpow2.f32 %v987_v9 }
 0x732   :  { %v1146_v31 = vpop.permute.xlu1 %1145 }
 0x733   :  { %3038 = vpow2.f32 %v989_v17  ;;  %v993_v40 = vmul.f32 1.442695, %v986_v18  ;;  %v1157_v38 = vsel %vm366_vm1, %v1146_v31, 0 }
 0x734   :  { %3040 = vpow2.f32 %v991_v7  ;;  %v1012_v22 = vpop.permute.xlu0 %1011 }
 0x735   :  { %3042 = vpow2.f32 %v993_v40  ;;  %2750 = vmatprep.subr.bf16.mxu1 %v1012_v22 }
 0x736   :  { %2751 = vmatpush3.bf16.msra.mxu1 %v1012_v22  ;;  %v1144_v29 = vpop.permute.xlu1 %1143 }
 0x737   :  { %2752 = vmatprep.subr.bf16.mxu1 %v1010_v63  ;;  %v1154_v41 = vsel %vm366_vm1, %v1144_v29, 0 }
 0x73a   :  { %2753 = vmatpush3.bf16.msra.mxu1 %v1010_v63 }
 0x73b   :  { %2886 = vmatprep.subr.msk.bf16.mxu1 %vm366_vm1, %v1146_v31 }
 0x73e   :  { %v3663_v23 = vpop.eup %3036 }
 0x740   :  { %v3665_v24 = vpop.eup %3038 }
 0x741   :  { %v3667_v26 = vpop.eup %3040  ;;  %v1007_v12 = vpack.c.bf16 %v3665_v24, %v3663_v23 }
 0x742   :  { %v3671_v37 = vpop.eup %3042  ;;  %v1001_v11 = vsel %vm432_vm4, %v3667_v26, 0.0 }
 0x743   :  { %2754 = vmatprep.mubr.msk.bf16.mxu1 %vm432_vm4, %v1007_v12  ;;  %v1008_v19 = vpack.c.bf16 %v3671_v37, %v3667_v26  ;;  %v1004_v10 = vsel %vm432_vm4, %v3671_v37, 0.0 }
 0x745   :  { %2755 = vmatmul.mubr.msk.bf16.vlgmr.msra.gmra.mxu1 %vm432_vm4, %v1008_v19 }
 0x746   :  { %2759 = vmatpush3.bf16.xpose.msra.mxu1 %v1157_v38  ;;  %2762 = vmatprep.mubr.msk.bf16.mxu1 %vm366_vm1, %v3444_v43 }
 0x747   :  { %2887 = vmatprep.subr.msk.bf16.mxu1 %vm366_vm1, %v1144_v29 }
 0x74e   :  { %2761 = vmatpush3.bf16.xpose.msra.mxu1 %v1154_v41 }
 0x755   :  { %2763 = vmatmul.mubr.msk.bf16.vlgmr.msra.gmra.mxu1 %vm366_vm1, %v3451_v49 }
 0x805   :  { %v3684_v42 = vpop.f32.mrf.mxu1 }
 0x807   :  { %v3686_v13 = vpop.f32.mrf.mxu1 }
 0x809   :  { %v3688_v54 = vpop.f32.mrf.mxu1 }
 0x80b   :  { %v3690_v56 = vpop.f32.mrf.mxu1 }
 0x815   :  { %v2764_v57 = vpop.f32.mrf.mxu1 }
 0x816   :  { %v1210_v1 = vsel %vm3477_vm6, %v2764_v57, -1e+30 }
 0x817   :  { %v1193_v58 = vpop.f32.mrf.mxu1  ;;  %v1218_v8 = vsel %vm432_vm4, %v1210_v1, -inf }
 0x818   :  { %v1208_v52 = vsel %vm3458_vm2, %v1193_v58, -1e+30 }
 0x819   :  { %v2765_v62 = vpop.f32.mrf.mxu1  ;;  %v1212_v63 = vsel %vm432_vm4, %v1208_v52, -inf }
 0x81a   :  { %1213 = vmax.xlane.f32.xlu0 %v1212_v63  ;;  %v1211_v5 = vsel %vm3464_vm3, %v2765_v62, -1e+30 }
 0x81b   :  { %v1196_v4 = vpop.f32.mrf.mxu1  ;;  %v1221_v7 = vsel %vm432_vm4, %v1211_v5, -inf }
 0x81c   :  { %v1209_v6 = vsel %vm3471_vm5, %v1196_v4, -1e+30 }
 0x81d   :  { %v1215_v9 = vsel %vm432_vm4, %v1209_v6, -inf }
 0x81e   :  { %1219 = vmax.xlane.f32.xlu0 %v1218_v8  ;;  %1216 = vmax.xlane.f32.xlu1 %v1215_v9 }
 0x822   :  { %1222 = vmax.xlane.f32.xlu0 %v1221_v7 }
 0x82f   :  { %1319 = vrot.lane.b32.xlu1 %v3444_v43, %s3254_s3 }
 0x833   :  { %1315 = vrot.lane.b32.xlu1 %v3444_v43, %s3255_s18 }
 0x837   :  { %1317 = vrot.lane.b32.xlu1 %v3451_v49, %s3255_s18 }
 0x838   :  { %1321 = vrot.lane.b32.xlu0 %v3451_v49, %s3254_s3 }
 0x83b   :  { %1428 = vrot.lane.b32.xlu1 %v3447_v21, %s3255_s18 }
 0x8a3   :  { %v1214_v15 = vpop.xlane.xlu0 %1213 }
 0x8a4   :  { %v1224_v17 = vsub.f32 %v1208_v52, %v1214_v15 }
 0x8a6   :  { %v1228_v22 = vmul.f32 1.442695, %v1224_v17 }
 0x8a7   :  { %v1220_v18 = vpop.xlane.xlu0 %1219  ;;  %v1217_v40 = vpop.xlane.xlu1 %1216 }
 0x8a8   :  { %v1226_v31 = vsub.f32 %v1210_v1, %v1220_v18  ;;  %v1225_v12 = vsub.f32 %v1209_v6, %v1217_v40  ;;  %3044 = vpow2.f32 %v1228_v22 }
 0x8aa   :  { %v1230_v19 = vmul.f32 1.442695, %v1225_v12  ;;  %v1232_v38 = vmul.f32 1.442695, %v1226_v31 }
 0x8ab   :  { %v1223_v29 = vpop.xlane.xlu0 %1222  ;;  %v1320_v63 = vpop.permute.xlu1 %1319 }
 0x8ac   :  { %v1227_v41 = vsub.f32 %v1211_v5, %v1223_v29  ;;  %3046 = vpow2.f32 %v1230_v19  ;;  %v1330_v7 = vsel %vm366_vm1, %v1320_v63, 0 }
 0x8ad   :  { %3048 = vpow2.f32 %v1232_v38 }
 0x8ae   :  { %v1234_v57 = vmul.f32 1.442695, %v1227_v41 }
 0x8af   :  { %v1322_v58 = vpop.permute.xlu0 %1321  ;;  %v1316_v5 = vpop.permute.xlu1 %1315 }
 0x8b0   :  { %3050 = vpow2.f32 %v1234_v57  ;;  %2888 = vmatprep.subr.msk.bf16.mxu0 %vm366_vm1, %v1322_v58  ;;  %v1333_v9 = vsel %vm366_vm1, %v1322_v58, 0 }
 0x8b3   :  { %v1318_v15 = vpop.permute.xlu1 %1317 }
 0x8b5   :  { %v3715_v62 = vpop.eup %3044 }
 0x8b9   :  { %v3717_v52 = vpop.eup %3046 }
 0x8ba   :  { %v1248_v1 = vpack.c.bf16 %v3717_v52, %v3715_v62  ;;  %v3721_v4 = vpop.eup %3048 }
 0x8bc   :  { %2770 = vmatprep.mubr.msk.bf16.mxu0 %vm432_vm4, %v1248_v1 }
 0x8bd   :  { %v3723_v6 = vpop.eup %3050 }
 0x8be   :  { %v1249_v8 = vpack.c.bf16 %v3723_v6, %v3721_v4 }
 0x8c0   :  { %2771 = vmatmul.mubr.msk.bf16.vlgmr.msra.gmra.mxu0 %vm432_vm4, %v1249_v8 }
 0x8c1   :  { %2775 = vmatpush3.bf16.xpose.msra.mxu0 %v1333_v9  ;;  %2778 = vmatprep.mubr.msk.bf16.mxu0 %vm366_vm1, %v1316_v5 }
 0x8c2   :  { %2889 = vmatprep.subr.msk.bf16.mxu0 %vm366_vm1, %v1320_v63 }
 0x8c9   :  { %2777 = vmatpush3.bf16.xpose.msra.mxu0 %v1330_v7  ;;  %v1429_v7 = vpop.permute.xlu1 %1428 }
 0x8d0   :  { %2779 = vmatmul.mubr.msk.bf16.vlgmr.msra.gmra.mxu0 %vm366_vm1, %v1318_v15 }
 0x980   :  { %v3734_v17 = vpop.f32.mrf.mxu0 }
 0x981   :  { %4250 = vst [vmem:[#allocation16_spill] sm:$0xff] %v3734_v17 }
 0x982   :  { %v3736_v18 = vpop.f32.mrf.mxu0 }
 0x983   :  { %4251 = vst [vmem:[#allocation17_spill] sm:$0xff] %v3736_v18 }
 0x984   :  { %v3738_v40 = vpop.f32.mrf.mxu0 }
 0x985   :  { %4252 = vst [vmem:[#allocation18_spill] sm:$0xff] %v3738_v40 }
 0x986   :  { %v3740_v22 = vpop.f32.mrf.mxu0 }
 0x987   :  { %4253 = vst [vmem:[#allocation19_spill] sm:$0xff] %v3740_v22 }
 0x990   :  { %v2780_v31 = vpop.f32.mrf.mxu0 }
 0x991   :  { %v1386_v12 = vsel %vm3477_vm6, %v2780_v31, -1e+30 }
 0x992   :  { %v1369_v19 = vpop.f32.mrf.mxu0  ;;  %v1394_v38 = vsel %vm432_vm4, %v1386_v12, -inf }
 0x993   :  { %v1384_v29 = vsel %vm3458_vm2, %v1369_v19, -1e+30  ;;  %1395 = vmax.xlane.f32.xlu0 %v1394_v38 }
 0x994   :  { %v2781_v41 = vpop.f32.mrf.mxu0  ;;  %v1388_v58 = vsel %vm432_vm4, %v1384_v29, -inf }
 0x995   :  { %v1387_v63 = vsel %vm3464_vm3, %v2781_v41, -1e+30 }
 0x996   :  { %v1372_v57 = vpop.f32.mrf.mxu0  ;;  %v1397_v9 = vsel %vm432_vm4, %v1387_v63, -inf }
 0x997   :  { %v1385_v1 = vsel %vm3471_vm5, %v1372_v57, -1e+30  ;;  %1389 = vmax.xlane.f32.xlu0 %v1388_v58 }
 0x998   :  { %v1391_v8 = vsel %vm432_vm4, %v1385_v1, -inf }
 0x999   :  { %1392 = vmax.xlane.f32.xlu1 %v1391_v8 }
 0x99b   :  { %1398 = vmax.xlane.f32.xlu0 %v1397_v9 }
 0x9aa   :  { %1503 = vrot.lane.b32.xlu1 %v3451_v49, %s3256_s2 }
 0x9ae   :  { %1501 = vrot.lane.b32.xlu1 %v3444_v43, %s3256_s2 }
 0x9b1   :  { %1430 = vrot.lane.b32.xlu0 %v3620_v25, %s3255_s18 }
 0x9b2   :  { %1499 = vrot.lane.b32.xlu1 %v3451_v49, %s3257_s19 }
 0x9b5   :  { %1497 = vrot.lane.b32.xlu0 %v3444_v43, %s3257_s19 }
 0x9b6   :  { %1608 = vrot.lane.b32.xlu1 %v3447_v21, %s3257_s19 }
 0xa1c   :  { %v1396_v5 = vpop.xlane.xlu0 %1395 }
 0xa1d   :  { %v1402_v15 = vsub.f32 %v1386_v12, %v1396_v5 }
 0xa1f   :  { %v1408_v58 = vmul.f32 1.442695, %v1402_v15 }
 0xa20   :  { %v1390_v31 = vpop.xlane.xlu0 %1389 }
 0xa21   :  { %v1400_v19 = vsub.f32 %v1384_v29, %v1390_v31 }
 0xa22   :  { %v1393_v38 = vpop.xlane.xlu1 %1392 }
 0xa23   :  { %v1404_v41 = vmul.f32 1.442695, %v1400_v19  ;;  %v1401_v57 = vsub.f32 %v1385_v1, %v1393_v38 }
 0xa24   :  { %v1399_v8 = vpop.xlane.xlu0 %1398 }
 0xa25   :  { %v1406_v9 = vmul.f32 1.442695, %v1401_v57  ;;  %v1403_v59 = vsub.f32 %v1387_v63, %v1399_v8  ;;  %3052 = vpow2.f32 %v1404_v41 }
 0xa26   :  { %v1504_v40 = vpop.permute.xlu1 %1503 }
 0xa27   :  { %3054 = vpow2.f32 %v1406_v9  ;;  %v1410_v22 = vmul.f32 1.442695, %v1403_v59 }
 0xa28   :  { %3056 = vpow2.f32 %v1408_v58  ;;  %v1431_v18 = vpop.permute.xlu0 %1430 }
 0xa29   :  { %3058 = vpow2.f32 %v1410_v22  ;;  %2782 = vmatprep.subr.bf16.mxu1 %v1431_v18  ;;  %v1515_v22 = vsel %vm366_vm1, %v1504_v40, 0 }
 0xa2a   :  { %2783 = vmatpush3.bf16.msra.mxu1 %v1431_v18 }
 0xa2b   :  { %2784 = vmatprep.subr.bf16.mxu1 %v1429_v7 }
 0xa2c   :  { %v1498_v5 = vpop.permute.xlu0 %1497 }
 0xa2e   :  { %2785 = vmatpush3.bf16.msra.mxu1 %v1429_v7  ;;  %v1502_v7 = vpop.permute.xlu1 %1501 }
 0xa2f   :  { %2890 = vmatprep.subr.msk.bf16.mxu1 %vm366_vm1, %v1504_v40  ;;  %v1512_v15 = vsel %vm366_vm1, %v1502_v7, 0 }
 0xa32   :  { %v3767_v12 = vpop.eup %3052  ;;  %v1500_v31 = vpop.permute.xlu1 %1499 }
 0xa34   :  { %v3769_v29 = vpop.eup %3054 }
 0xa35   :  { %v3771_v1 = vpop.eup %3056  ;;  %v1424_v63 = vpack.c.bf16 %v3769_v29, %v3767_v12 }
 0xa36   :  { %v3775_v59 = vpop.eup %3058 }
 0xa37   :  { %2786 = vmatprep.mubr.msk.bf16.mxu1 %vm432_vm4, %v1424_v63  ;;  %v1425_v18 = vpack.c.bf16 %v3775_v59, %v3771_v1 }
 0xa39   :  { %2787 = vmatmul.mubr.msk.bf16.vlgmr.msra.gmra.mxu1 %vm432_vm4, %v1425_v18 }
 0xa3a   :  { %2791 = vmatpush3.bf16.xpose.msra.mxu1 %v1515_v22  ;;  %2794 = vmatprep.mubr.msk.bf16.mxu1 %vm366_vm1, %v1498_v5 }
 0xa3b   :  { %2891 = vmatprep.subr.msk.bf16.mxu1 %vm366_vm1, %v1502_v7 }
 0xa42   :  { %2793 = vmatpush3.bf16.xpose.msra.mxu1 %v1512_v15 }
 0xa49   :  { %2795 = vmatmul.mubr.msk.bf16.vlgmr.msra.gmra.mxu1 %vm366_vm1, %v1500_v31 }
 0xaf9   :  { %v3786_v19 = vpop.f32.mrf.mxu1 }
 0xafb   :  { %v3788_v38 = vpop.f32.mrf.mxu1 }
 0xafd   :  { %v3790_v40 = vpop.f32.mrf.mxu1 }
 0xafe   :  { %4254 = vst [vmem:[#allocation20_spill] sm:$0xff] %v3790_v40 }
 0xaff   :  { %v3792_v41 = vpop.f32.mrf.mxu1 }
 0xb09   :  { %v2796_v57 = vpop.f32.mrf.mxu1 }
 0xb0a   :  { %v1568_v58 = vsel %vm3477_vm6, %v2796_v57, -1e+30 }
 0xb0b   :  { %v1551_v8 = vpop.f32.mrf.mxu1  ;;  %v1576_v9 = vsel %vm432_vm4, %v1568_v58, -inf }
 0xb0c   :  { %v1566_v63 = vsel %vm3458_vm2, %v1551_v8, -1e+30  ;;  %1577 = vmax.xlane.f32.xlu0 %v1576_v9  ;;  %v1609_v9 = vpop.permute.xlu1 %1608 }
 0xb0d   :  { %v2797_v18 = vpop.f32.mrf.mxu1  ;;  %v1570_v5 = vsel %vm432_vm4, %v1566_v63, -inf }
 0xb0e   :  { %v1569_v7 = vsel %vm3464_vm3, %v2797_v18, -1e+30 }
 0xb0f   :  { %v1554_v22 = vpop.f32.mrf.mxu1  ;;  %v1579_v57 = vsel %vm432_vm4, %v1569_v7, -inf }
 0xb10   :  { %v1567_v15 = vsel %vm3471_vm5, %v1554_v22, -1e+30  ;;  %1571 = vmax.xlane.f32.xlu0 %v1570_v5 }
 0xb11   :  { %v1573_v31 = vsel %vm432_vm4, %v1567_v15, -inf }
 0xb12   :  { %1574 = vmax.xlane.f32.xlu1 %v1573_v31 }
 0xb14   :  { %1580 = vmax.xlane.f32.xlu0 %v1579_v57 }
 0xb23   :  { %1683 = vrot.lane.b32.xlu1 %v3451_v49, %s3258_s20 }
 0xb27   :  { %1681 = vrot.lane.b32.xlu1 %v3444_v43, %s3258_s20 }
 0xb2a   :  { %1610 = vrot.lane.b32.xlu0 %v3620_v25, %s3257_s19 }
 0xb2b   :  { %1679 = vrot.lane.b32.xlu1 %v3451_v49, %s3259_s21 }
 0xb2e   :  { %1677 = vrot.lane.b32.xlu0 %v3444_v43, %s3259_s21 }
 0xb95   :  { %v1578_v8 = vpop.xlane.xlu0 %1577 }
 0xb96   :  { %v1584_v18 = vsub.f32 %v1568_v58, %v1578_v8 }
 0xb98   :  { %v1590_v48 = vmul.f32 1.442695, %v1584_v18 }
 0xb99   :  { %v1572_v22 = vpop.xlane.xlu0 %1571 }
 0xb9a   :  { %v1582_v5 = vsub.f32 %v1566_v63, %v1572_v22 }
 0xb9b   :  { %v1575_v31 = vpop.xlane.xlu1 %1574 }
 0xb9c   :  { %v1586_v57 = vmul.f32 1.442695, %v1582_v5  ;;  %v1583_v17 = vsub.f32 %v1567_v15, %v1575_v31 }
 0xb9d   :  { %v1581_v46 = vpop.xlane.xlu0 %1580 }
 0xb9e   :  { %v1588_v51 = vmul.f32 1.442695, %v1583_v17  ;;  %v1585_v47 = vsub.f32 %v1569_v7, %v1581_v46  ;;  %3060 = vpow2.f32 %v1586_v57 }
 0xb9f   :  { %v1684_v43 = vpop.permute.xlu1 %1683 }
 0xba0   :  { %3062 = vpow2.f32 %v1588_v51  ;;  %v1592_v40 = vmul.f32 1.442695, %v1585_v47  ;;  %v1695_v51 = vsel %vm366_vm1, %v1684_v43, 0 }
 0xba1   :  { %3064 = vpow2.f32 %v1590_v48  ;;  %v1611_v49 = vpop.permute.xlu0 %1610 }
 0xba2   :  { %3066 = vpow2.f32 %v1592_v40  ;;  %2798 = vmatprep.subr.bf16.mxu0 %v1611_v49 }
 0xba3   :  { %2799 = vmatpush3.bf16.msra.mxu0 %v1611_v49  ;;  %v1682_v40 = vpop.permute.xlu1 %1681 }
 0xba4   :  { %2800 = vmatprep.subr.bf16.mxu0 %v1609_v9  ;;  %v1692_v7 = vsel %vm366_vm1, %v1682_v40, 0 }
 0xba5   :  { %v1678_v17 = vpop.permute.xlu0 %1677 }
 0xba7   :  { %2801 = vmatpush3.bf16.msra.mxu0 %v1609_v9  ;;  %v1680_v8 = vpop.permute.xlu1 %1679 }
 0xba8   :  { %2892 = vmatprep.subr.msk.bf16.mxu0 %vm366_vm1, %v1684_v43 }
 0xbab   :  { %v3817_v58 = vpop.eup %3060 }
 0xbac   :  { %v1594_v37 = vsel %vm432_vm4, %v3817_v58, 0.0 }
 0xbad   :  { %v3819_v63 = vpop.eup %3062 }
 0xbae   :  { %v3821_v15 = vpop.eup %3064  ;;  %v1606_v46 = vpack.c.bf16 %v3819_v63, %v3817_v58  ;;  %v1597_v26 = vsel %vm432_vm4, %v3819_v63, 0.0 }
 0xbaf   :  { %v3825_v47 = vpop.eup %3066 }
 0xbb0   :  { %2802 = vmatprep.mubr.msk.bf16.mxu0 %vm432_vm4, %v1606_v46  ;;  %v1607_v48 = vpack.c.bf16 %v3825_v47, %v3821_v15 }
 0xbb2   :  { %2803 = vmatmul.mubr.msk.bf16.vlgmr.msra.gmra.mxu0 %vm432_vm4, %v1607_v48 }
 0xbb3   :  { %2807 = vmatpush3.bf16.xpose.msra.mxu0 %v1695_v51  ;;  %2810 = vmatprep.mubr.msk.bf16.mxu0 %vm366_vm1, %v1678_v17 }
 0xbb4   :  { %2893 = vmatprep.subr.msk.bf16.mxu0 %vm366_vm1, %v1682_v40 }
 0xbbb   :  { %2809 = vmatpush3.bf16.xpose.msra.mxu0 %v1692_v7 }
 0xbc2   :  { %2811 = vmatmul.mubr.msk.bf16.vlgmr.msra.gmra.mxu0 %vm366_vm1, %v1680_v8  ;;  %v642_v8 = vsel %vm432_vm4, %v3590_v44, 0.0  ;;  %v821_v44 = vsel %vm432_vm4, %v3605_v14, 0.0  ;;  %v1415_v14 = vsel %vm432_vm4, %v3769_v29, 0.0  ;;  %v1600_v29 = vsel %vm432_vm4, %v3821_v15, 0.0 }
 0xc72   :  { %v3836_v9 = vpop.f32.mrf.mxu0 }
 0xc74   :  { %v3838_v18 = vpop.f32.mrf.mxu0 }
 0xc76   :  { %v3840_v22 = vpop.f32.mrf.mxu0 }
 0xc78   :  { %v3842_v5 = vpop.f32.mrf.mxu0 }
 0xc82   :  { %v2812_v31 = vpop.f32.mrf.mxu0 }
 0xc83   :  { %v1748_v57 = vsel %vm3477_vm6, %v2812_v31, -1e+30  ;;  %v639_v31 = vsel %vm432_vm4, %v3592_v53, 0.0  ;;  %v998_v53 = vsel %vm432_vm4, %v3665_v24, 0.0  ;;  %v1418_v24 = vsel %vm432_vm4, %v3771_v1, 0.0 }
 0xc84   :  { %v1731_v49 = vpop.f32.mrf.mxu0  ;;  %v1756_v43 = vsel %vm432_vm4, %v1748_v57, -inf }
 0xc85   :  { %v1746_v46 = vsel %vm3458_vm2, %v1731_v49, -1e+30  ;;  %1757 = vmax.xlane.f32.xlu0 %v1756_v43 }
 0xc86   :  { %v2813_v48 = vpop.f32.mrf.mxu0  ;;  %v1750_v17 = vsel %vm432_vm4, %v1746_v46, -inf }
 0xc87   :  { %v3852_v40 = vsel %vm3464_vm3, %v2813_v48, -1e+30 }
 0xc88   :  { %v1734_v51 = vpop.f32.mrf.mxu0  ;;  %v1759_v55 = vsel %vm432_vm4, %v3852_v40, -inf }
 0xc89   :  { %v1747_v7 = vsel %vm3471_vm5, %v1734_v51, -1e+30  ;;  %1751 = vmax.xlane.f32.xlu0 %v1750_v17 }
 0xc8a   :  { %v1753_v2 = vsel %vm432_vm4, %v1747_v7, -inf }
 0xc8b   :  { %1754 = vmax.xlane.f32.xlu1 %v1753_v2 }
 0xc8d   :  { %1760 = vmax.xlane.f32.xlu0 %v1759_v55 }
 0xc9c   :  { %1788 = vrot.lane.b32.xlu1 %v3447_v21, %s3259_s21  ;;  %v818_v21 = vsel %vm432_vm4, %v3603_v61, 0.0  ;;  %v995_v61 = vsel %vm432_vm4, %v3663_v23, 0.0  ;;  %v1421_v23 = vsel %vm432_vm4, %v3775_v59, 0.0 }
 0xca3   :  { %1790 = vrot.lane.b32.xlu0 %v3620_v25, %s3259_s21  ;;  %v1412_v25 = vsel %vm432_vm4, %v3767_v12, 0.0  ;;  %v1603_v12 = vsel %vm432_vm4, %v3825_v47, 0.0 }
 0xcc0   :  { %634 = vadd.xlane.f32.xlu1 %v633_v60 }
 0xcc2   :  { %637 = vadd.xlane.f32.xlu0 %v636_v0 }
 0xcc4   :  { %643 = vadd.xlane.f32.xlu1 %v642_v8 }
 0xcc6   :  { %640 = vadd.xlane.f32.xlu0 %v639_v31 }
 0xcc8   :  { %819 = vadd.xlane.f32.xlu1 %v818_v21 }
 0xcca   :  { %816 = vadd.xlane.f32.xlu0 %v815_v39 }
 0xccc   :  { %825 = vadd.xlane.f32.xlu1 %v824_v16 }
 0xcce   :  { %822 = vadd.xlane.f32.xlu0 %v821_v44  ;;  %v457_v44 = vsel %vm432_vm4, %v3505_v27, 0.0  ;;  %v1239_v27 = vsel %vm432_vm4, %v3717_v52, 0.0 }
 0xcd0   :  { %999 = vadd.xlane.f32.xlu1 %v998_v53  ;;  %v460_v53 = vsel %vm432_vm4, %v3507_v28, 0.0  ;;  %v1242_v28 = vsel %vm432_vm4, %v3721_v4, 0.0 }
 0xcd2   :  { %996 = vadd.xlane.f32.xlu0 %v995_v61  ;;  %v463_v61 = vsel %vm432_vm4, %v3513_v33, 0.0  ;;  %v1245_v33 = vsel %vm432_vm4, %v3723_v6, 0.0  ;;  %v2980_v6 = vld [vmem:[%s4230_s4 + $0x18] sm:$0xff]  }
 0xcd4   :  { %1005 = vadd.xlane.f32.xlu1 %v1004_v10  ;;  %v466_v10 = vsel %vm432_vm4, %v3511_v32, 0.0 }
 0xcd6   :  { %1002 = vadd.xlane.f32.xlu0 %v1001_v11  ;;  %v1236_v11 = vsel %vm432_vm4, %v3715_v62, 0.0 }
 0xcd8   :  { %1416 = vadd.xlane.f32.xlu1 %v1415_v14 }
 0xcda   :  { %1413 = vadd.xlane.f32.xlu0 %v1412_v25 }
 0xcdc   :  { %1422 = vadd.xlane.f32.xlu1 %v1421_v23 }
 0xcde   :  { %1419 = vadd.xlane.f32.xlu0 %v1418_v24 }
 0xce0   :  { %1598 = vadd.xlane.f32.xlu1 %v1597_v26 }
 0xce2   :  { %1595 = vadd.xlane.f32.xlu0 %v1594_v37 }
 0xce4   :  { %1604 = vadd.xlane.f32.xlu1 %v1603_v12 }
 0xce6   :  { %1601 = vadd.xlane.f32.xlu0 %v1600_v29 }
 0xd0e   :  { %v1758_v59 = vpop.xlane.xlu0 %1757 }
 0xd0f   :  { %v1764_v49 = vsub.f32 %v1748_v57, %v1758_v59 }
 0xd11   :  { %v1770_v48 = vmul.f32 1.442695, %v1764_v49 }
 0xd12   :  { %v1752_v1 = vpop.xlane.xlu0 %1751 }
 0xd13   :  { %v1762_v43 = vsub.f32 %v1746_v46, %v1752_v1 }
 0xd14   :  { %v1755_v51 = vpop.xlane.xlu1 %1754 }
 0xd15   :  { %v1766_v63 = vmul.f32 1.442695, %v1762_v43  ;;  %v1763_v17 = vsub.f32 %v1747_v7, %v1755_v51 }
 0xd16   :  { %v1761_v2 = vpop.xlane.xlu0 %1760 }
 0xd17   :  { %3068 = vpow2.f32 %v1766_v63  ;;  %v1768_v58 = vmul.f32 1.442695, %v1763_v17  ;;  %v1765_v55 = vsub.f32 %v3852_v40, %v1761_v2 }
 0xd18   :  { %3070 = vpow2.f32 %v1770_v48  ;;  %v1789_v15 = vpop.permute.xlu1 %1788  ;;  %v2981_v48 = vld [vmem:[%s4230_s4 + $0x10] sm:$0xff]  }
 0xd19   :  { %3072 = vpow2.f32 %v1768_v58  ;;  %v1772_v47 = vmul.f32 1.442695, %v1765_v55  ;;  %v2982_v55 = vld [vmem:[%s4230_s4 + $0x8] sm:$0xff]  }
 0xd1a   :  { %v1791_v60 = vpop.permute.xlu0 %1790 }
 0xd1b   :  { %3074 = vpow2.f32 %v1772_v47  ;;  %2814 = vmatprep.subr.bf16.mxu1 %v1791_v60 }
 0xd1c   :  { %2815 = vmatpush3.bf16.msra.mxu1 %v1791_v60 }
 0xd1d   :  { %2816 = vmatprep.subr.bf16.mxu1 %v1789_v15 }
 0xd20   :  { %2817 = vmatpush3.bf16.msra.mxu1 %v1789_v15 }
 0xd21   :  { %2822 = vmatprep.subr.bf16.mxu1 %v2980_v6 }
 0xd24   :  { %v3069_v57 = vpop.eup %3068 }
 0xd25   :  { %v3071_v46 = vpop.eup %3070  ;;  %v1774_v0 = vsel %vm432_vm4, %v3069_v57, 0.0 }
 0xd26   :  { %v3073_v7 = vpop.eup %3072  ;;  %1775 = vadd.xlane.f32.xlu0 %v1774_v0  ;;  %v1780_v21 = vsel %vm432_vm4, %v3071_v46, 0.0  ;;  %v2983_v0 = vld [vmem:[%s4230_s4] sm:$0xff]  }
 0xd27   :  { %v1777_v8 = vsel %vm432_vm4, %v3073_v7, 0.0  ;;  %v1786_v31 = vpack.c.bf16 %v3073_v7, %v3069_v57 }
 0xd28   :  { %v3075_v40 = vpop.eup %3074  ;;  %1778 = vadd.xlane.f32.xlu1 %v1777_v8 }
 0xd29   :  { %2818 = vmatprep.mubr.msk.bf16.mxu1 %vm432_vm4, %v1786_v31  ;;  %v1787_v39 = vpack.c.bf16 %v3075_v40, %v3071_v46  ;;  %v1783_v16 = vsel %vm432_vm4, %v3075_v40, 0.0 }
 0xd2a   :  { %1781 = vadd.xlane.f32.xlu0 %v1780_v21 }
 0xd2b   :  { %2819 = vmatmul.mubr.msk.bf16.vlgmr.msra.gmra.mxu1 %vm432_vm4, %v1787_v39 }
 0xd2c   :  { %1784 = vadd.xlane.f32.xlu1 %v1783_v16  ;;  %2823 = vmatpush3.bf16.msra.mxu1 %v2980_v6 }
 0xd2d   :  { %2824 = vmatprep.subr.bf16.mxu1 %v2981_v48 }
 0xd2e   :  { %458 = vadd.xlane.f32.xlu0 %v457_v44 }
 0xd30   :  { %461 = vadd.xlane.f32.xlu1 %v460_v53  ;;  %2825 = vmatpush3.bf16.msra.mxu1 %v2981_v48 }
 0xd31   :  { %2826 = vmatprep.subr.bf16.mxu1 %v2982_v55 }
 0xd32   :  { %464 = vadd.xlane.f32.xlu0 %v463_v61 }
 0xd34   :  { %467 = vadd.xlane.f32.xlu1 %v466_v10  ;;  %2827 = vmatpush3.bf16.msra.mxu1 %v2982_v55 }
 0xd35   :  { %2828 = vmatprep.subr.bf16.mxu1 %v2983_v0 }
 0xd36   :  { %1237 = vadd.xlane.f32.xlu0 %v1236_v11 }
 0xd38   :  { %1240 = vadd.xlane.f32.xlu1 %v1239_v27  ;;  %2829 = vmatpush3.bf16.msra.mxu1 %v2983_v0 }
 0xd3a   :  { %1243 = vadd.xlane.f32.xlu0 %v1242_v28 }
 0xd3c   :  { %1246 = vadd.xlane.f32.xlu1 %v1245_v33 }
 0xd49   :  { %v635_v14 = vpop.xlane.xlu1 %634 }
 0xd4a   :  { %3076 = vrcp.f32 %v635_v14 }
 0xd4b   :  { %v638_v32 = vpop.xlane.xlu0 %637 }
 0xd4c   :  { %3078 = vrcp.f32 %v638_v32 }
 0xd4d   :  { %v644_v25 = vpop.xlane.xlu1 %643 }
 0xd4e   :  { %3080 = vrcp.f32 %v644_v25 }
 0xd4f   :  { %v641_v62 = vpop.xlane.xlu0 %640 }
 0xd50   :  { %3082 = vrcp.f32 %v641_v62 }
 0xd51   :  { %v820_v23 = vpop.xlane.xlu1 %819 }
 0xd52   :  { %3084 = vrcp.f32 %v820_v23 }
 0xd53   :  { %v817_v52 = vpop.xlane.xlu0 %816 }
 0xd54   :  { %3086 = vrcp.f32 %v817_v52 }
 0xd55   :  { %v826_v24 = vpop.xlane.xlu1 %825 }
 0xd56   :  { %3088 = vrcp.f32 %v826_v24  ;;  %v4255_v24 = vld [vmem:[#allocation20_spill] sm:$0xff] }
 0xd57   :  { %v3077_v4 = vpop.eup %3076  ;;  %v823_v26 = vpop.xlane.xlu0 %822 }
 0xd58   :  { %3090 = vrcp.f32 %v823_v26  ;;  %v714_v29 = vmul.f32 %v3077_v4, %v3630_v30 }
 0xd59   :  { %v3079_v37 = vpop.eup %3078  ;;  %v1000_v12 = vpop.xlane.xlu1 %999 }
 0xd5a   :  { %3092 = vrcp.f32 %v1000_v12  ;;  %v715_v59 = vmul.f32 %v3079_v37, %v3634_v50 }
 0xd5b   :  { %v3081_v49 = vpop.eup %3080  ;;  %v997_v1 = vpop.xlane.xlu0 %996 }
 0xd5c   :  { %3094 = vrcp.f32 %v997_v1  ;;  %v2908_v43 = vpack.i.bf16 %v715_v59, %v714_v29  ;;  %v717_v30 = vmul.f32 %v3081_v49, %v3632_v3 }
 0xd5d   :  { %v3083_v51 = vpop.eup %3082  ;;  %v1006_v63 = vpop.xlane.xlu1 %1005 }
 0xd5e   :  { %3096 = vrcp.f32 %v1006_v63  ;;  %2909 = vrot.lane.b32.xlu0 %v2908_v43, %s3258_s20  ;;  %v716_v17 = vmul.f32 %v3083_v51, %v3628_v45 }
 0xd5f   :  { %v3085_v50 = vpop.eup %3084  ;;  %v1003_v2 = vpop.xlane.xlu0 %1002 }
 0xd60   :  { %3098 = vrcp.f32 %v1003_v2  ;;  %v2913_v58 = vpack.i.bf16 %v717_v30, %v716_v17  ;;  %v895_v45 = vmul.f32 %v3085_v50, %v3642_v20 }
 0xd61   :  { %v3087_v47 = vpop.eup %3086  ;;  %v1417_v60 = vpop.xlane.xlu1 %1416 }
 0xd62   :  { %3100 = vrcp.f32 %v1417_v60  ;;  %2914 = vrot.lane.b32.xlu1 %v2913_v58, %s3258_s20  ;;  %v894_v15 = vmul.f32 %v3087_v47, %v3638_v35 }
 0xd63   :  { %v3089_v3 = vpop.eup %3088  ;;  %v1414_v57 = vpop.xlane.xlu0 %1413 }
 0xd64   :  { %3102 = vrcp.f32 %v1414_v57  ;;  %v2918_v46 = vpack.i.bf16 %v895_v45, %v894_v15  ;;  %v897_v35 = vmul.f32 %v3089_v3, %v3640_v36  ;;  %v4256_v3 = vld [vmem:[#allocation13_spill] sm:$0xff] }
 0xd65   :  { %v3091_v7 = vpop.eup %3090  ;;  %v1423_v8 = vpop.xlane.xlu1 %1422 }
 0xd66   :  { %3104 = vrcp.f32 %v1423_v8  ;;  %2919 = vrot.lane.b32.xlu1 %v2918_v46, %s3256_s2  ;;  %v896_v31 = vmul.f32 %v3091_v7, %v3636_v34  ;;  %v4257_v46 = vld [vmem:[#allocation15_spill] sm:$0xff] }
 0xd67   :  { %v3093_v20 = vpop.eup %3092  ;;  %v1420_v40 = vpop.xlane.xlu0 %1419 }
 0xd68   :  { %3106 = vrcp.f32 %v1420_v40  ;;  %v2923_v21 = vpack.i.bf16 %v897_v35, %v896_v31  ;;  %v1075_v53 = vmul.f32 %v3093_v20, %v3690_v56 }
 0xd69   :  { %v3095_v39 = vpop.eup %3094  ;;  %v1599_v16 = vpop.xlane.xlu1 %1598 }
 0xd6a   :  { %3108 = vrcp.f32 %v1599_v16  ;;  %2924 = vrot.lane.b32.xlu1 %v2923_v21, %s3256_s2  ;;  %v1074_v44 = vmul.f32 %v3095_v39, %v3686_v13 }
 0xd6b   :  { %v3097_v61 = vpop.eup %3096  ;;  %v1596_v10 = vpop.xlane.xlu0 %1595 }
 0xd6c   :  { %3110 = vrcp.f32 %v1596_v10  ;;  %v2928_v34 = vpack.i.bf16 %v1075_v53, %v1074_v44  ;;  %v1077_v28 = vmul.f32 %v3097_v61, %v3688_v54 }
 0xd6d   :  { %v3099_v36 = vpop.eup %3098  ;;  %v1605_v11 = vpop.xlane.xlu1 %1604 }
 0xd6e   :  { %3112 = vrcp.f32 %v1605_v11  ;;  %2929 = vrot.lane.b32.xlu0 %v2928_v34, %s3254_s3  ;;  %v1076_v27 = vmul.f32 %v3099_v36, %v3684_v42 }
 0xd6f   :  { %v3101_v33 = vpop.eup %3100  ;;  %v1602_v14 = vpop.xlane.xlu0 %1601 }
 0xd70   :  { %3114 = vrcp.f32 %v1602_v14  ;;  %v2933_v32 = vpack.i.bf16 %v1077_v28, %v1076_v27  ;;  %v1494_v25 = vmul.f32 %v3101_v33, %v3792_v41  ;;  %v4258_v27 = vld [vmem:[#allocation12_spill] sm:$0xff]  ;;  %v4259_v33 = vld [vmem:[#allocation14_spill] sm:$0xff] }
 0xd71   :  { %v3103_v13 = vpop.eup %3102 }
 0xd72   :  { %2934 = vrot.lane.b32.xlu1 %v2933_v32, %s3254_s3  ;;  %v1493_v56 = vmul.f32 %v3103_v13, %v3788_v38 }
 0xd73   :  { %v3105_v62 = vpop.eup %3104 }
 0xd74   :  { %v2938_v23 = vpack.i.bf16 %v1494_v25, %v1493_v56  ;;  %v1496_v54 = vmul.f32 %v3105_v62, %v4255_v24 }
 0xd75   :  { %v3107_v52 = vpop.eup %3106 }
 0xd76   :  { %2939 = vrot.lane.b32.xlu0 %v2938_v23, %s3258_s20  ;;  %v1495_v42 = vmul.f32 %v3107_v52, %v3786_v19 }
 0xd77   :  { %v3109_v4 = vpop.eup %3108 }
 0xd78   :  { %v2943_v26 = vpack.i.bf16 %v1496_v54, %v1495_v42  ;;  %v1674_v38 = vmul.f32 %v3109_v4, %v3842_v5 }
 0xd79   :  { %v3111_v6 = vpop.eup %3110 }
 0xd7a   :  { %2944 = vrot.lane.b32.xlu1 %v2943_v26, %s3258_s20  ;;  %v1673_v37 = vmul.f32 %v3111_v6, %v3838_v18 }
 0xd7b   :  { %v3113_v12 = vpop.eup %3112 }
 0xd7c   :  { %v2948_v41 = vpack.i.bf16 %v1674_v38, %v1673_v37  ;;  %v1676_v19 = vmul.f32 %v3113_v12, %v3840_v22 }
 0xd7d   :  { %v3115_v29 = vpop.eup %3114 }
 0xd7e   :  { %2949 = vrot.lane.b32.xlu0 %v2948_v41, %s3256_s2  ;;  %v1675_v59 = vmul.f32 %v3115_v29, %v3836_v9 }
 0xd80   :  { %v2953_v49 = vpack.i.bf16 %v1676_v19, %v1675_v59 }
 0xd82   :  { %2954 = vrot.lane.b32.xlu1 %v2953_v49, %s3256_s2 }
 0xdaf   :  { %v1776_v43 = vpop.xlane.xlu0 %1775 }
 0xdb1   :  { %v1779_v1 = vpop.xlane.xlu1 %1778 }
 0xdb3   :  { %v1782_v51 = vpop.xlane.xlu0 %1781 }
 0xdb5   :  { %v1785_v48 = vpop.xlane.xlu1 %1784 }
 0xdb7   :  { %v459_v18 = vpop.xlane.xlu0 %458 }
 0xdb8   :  { %3116 = vrcp.f32 %v459_v18 }
 0xdb9   :  { %v462_v63 = vpop.xlane.xlu1 %461 }
 0xdba   :  { %3118 = vrcp.f32 %v462_v63 }
 0xdbb   :  { %v465_v5 = vpop.xlane.xlu0 %464 }
 0xdbc   :  { %3120 = vrcp.f32 %v465_v5 }
 0xdbd   :  { %v468_v17 = vpop.xlane.xlu1 %467 }
 0xdbe   :  { %3122 = vrcp.f32 %v468_v17 }
 0xdbf   :  { %v3970_v50 = vpop.xlane.xlu0 %1237  ;;  %3124 = vrcp.f32 %v1776_v43 }
 0xdc0   :  { %3126 = vrcp.f32 %v1782_v51 }
 0xdc1   :  { %v3968_v30 = vpop.xlane.xlu1 %1240  ;;  %3128 = vrcp.f32 %v1785_v48 }
 0xdc2   :  { %3130 = vrcp.f32 %v1779_v1 }
 0xdc3   :  { %v3974_v2 = vpop.xlane.xlu0 %1243  ;;  %3132 = vrcp.f32 %v3970_v50 }
 0xdc4   :  { %3134 = vrcp.f32 %v3974_v2 }
 0xdc5   :  { %v3972_v9 = vpop.xlane.xlu1 %1246  ;;  %v3117_v47 = vpop.eup %3116 }
 0xdc6   :  { %v532_v57 = vmul.f32 %v3117_v47, %v4256_v3  ;;  %3136 = vrcp.f32 %v3972_v9 }
 0xdc7   :  { %v3119_v60 = vpop.eup %3118  ;;  %3138 = vrcp.f32 %v3968_v30 }
 0xdc8   :  { %v533_v0 = vmul.f32 %v3119_v60, %v4257_v46 }
 0xdc9   :  { %v3121_v31 = vpop.eup %3120 }
 0xdca   :  { %v534_v28 = vmul.f32 %v3121_v31, %v4258_v27  ;;  %v4262_v31 = vld [vmem:[#allocation17_spill] sm:$0xff] }
 0xdcb   :  { %v3123_v20 = vpop.eup %3122 }
 0xdcc   :  { %v535_v14 = vmul.f32 %v3123_v20, %v4259_v33  ;;  %v3125_v37 = vpop.eup %3124 }
 0xdcd   :  { %v3127_v12 = vpop.eup %3126 }
 0xdce   :  { %v3129_v41 = vpop.eup %3128 }
 0xdcf   :  { %v3131_v1 = vpop.eup %3130 }
 0xdd0   :  { %v2910_v58 = vpop.permute.xlu0 %2909 }
 0xdd1   :  { %v2912_v15 = vunpack.i.h.bf16 %v2910_v58  ;;  %v2911_v45 = vunpack.i.l.bf16 %v2910_v58 }
 0xdd3   :  { %v1126_v40 = vsel %vm366_vm1, %v532_v57, %v2911_v45  ;;  %v1127_v21 = vsel %vm366_vm1, %v533_v0, %v2912_v15 }
 0xdd4   :  { %v2915_v22 = vpop.permute.xlu1 %2914 }
 0xdd5   :  { %v2917_v16 = vunpack.i.h.bf16 %v2915_v22  ;;  %v2916_v44 = vunpack.i.l.bf16 %v2915_v22  ;;  %v3133_v22 = vpop.eup %3132 }
 0xdd6   :  { %v3135_v58 = vpop.eup %3134  ;;  %v1311_v30 = vmul.f32 %v3133_v22, %v4262_v31 }
 0xdd7   :  { %v1129_v62 = vsel %vm366_vm1, %v535_v14, %v2917_v16  ;;  %v1128_v23 = vsel %vm366_vm1, %v534_v28, %v2916_v44  ;;  %v3137_v47 = vpop.eup %3136 }
 0xdd8   :  { %v2920_v55 = vpop.permute.xlu1 %2919  ;;  %v3139_v60 = vpop.eup %3138 }
 0xdd9   :  { %v2922_v7 = vunpack.i.h.bf16 %v2920_v55  ;;  %v2921_v8 = vunpack.i.l.bf16 %v2920_v55 }
 0xddb   :  { %v1131_v10 = vsel %vm432_vm4, %v1127_v21, %v2922_v7  ;;  %v1130_v34 = vsel %vm432_vm4, %v1126_v40, %v2921_v8  ;;  %v4260_v7 = vld [vmem:[#allocation16_spill] sm:$0xff]  ;;  %v4261_v8 = vld [vmem:[#allocation18_spill] sm:$0xff] }
 0xddc   :  { %v2925_v35 = vpop.permute.xlu1 %2924  ;;  %v1313_v2 = vmul.f32 %v3135_v58, %v4260_v7  ;;  %v1314_v9 = vmul.f32 %v3137_v47, %v4261_v8 }
 0xddd   :  { %v2927_v36 = vunpack.i.h.bf16 %v2925_v35  ;;  %v2926_v11 = vunpack.i.l.bf16 %v2925_v35  ;;  %v4263_v35 = vld [vmem:[#allocation19_spill] sm:$0xff] }
 0xdde   :  { %v1312_v20 = vmul.f32 %v3139_v60, %v4263_v35 }
 0xddf   :  { %v1132_v24 = vsel %vm432_vm4, %v1128_v23, %v2926_v11  ;;  %v1133_v54 = vsel %vm432_vm4, %v1129_v62, %v2927_v36 }
 0xde0   :  { %v2930_v39 = vpop.permute.xlu0 %2929 }
 0xde1   :  { %v2932_v53 = vunpack.i.h.bf16 %v2930_v39  ;;  %v2931_v61 = vunpack.i.l.bf16 %v2930_v39 }
 0xde3   :  { %v1135_v32 = vsel %vm1134_vm7, %v1130_v34, %v2931_v61  ;;  %v1136_v13 = vsel %vm1134_vm7, %v1131_v10, %v2932_v53 }
 0xde4   :  { %v1917_v56 = vpack.c.bf16 %v1136_v13, %v1135_v32  ;;  %v2935_v25 = vpop.permute.xlu1 %2934 }
 0xde5   :  { %v2937_v52 = vunpack.i.h.bf16 %v2935_v25  ;;  %v2936_v42 = vunpack.i.l.bf16 %v2935_v25 }
 0xde6   :  { %2830 = vmatprep.mubr.msk.bf16.mxu1 %vm68_vm0, %v1917_v56 }
 0xde7   :  { %v1137_v4 = vsel %vm1134_vm7, %v1132_v24, %v2936_v42  ;;  %v1138_v26 = vsel %vm1134_vm7, %v1133_v54, %v2937_v52  ;;  %v4264_v42 = vld [vmem:[#allocation11_spill] sm:$0xff] }
 0xde8   :  { %v1918_v6 = vpack.c.bf16 %v1138_v26, %v1137_v4  ;;  %v2940_v5 = vpop.permute.xlu0 %2939  ;;  %v1931_v24 = vsub.s32 4, %v4264_v42  ;;  %v4022_v54 = vld [vmem:[%s4227_s1] sm:$0x3f] }
 0xde9   :  { %v2942_v57 = vunpack.i.h.bf16 %v2940_v5  ;;  %v2941_v46 = vunpack.i.l.bf16 %v2940_v5 }
 0xdea   :  { %2831 = vmatmul.mubr.msk.bf16.vlgmr.msra.gmra.mxu1 %vm68_vm0, %v1918_v6  ;;  %v1932_v4 = vrot.slane %v4022_v54, %v1931_v24  ;;  %v2984_v24 = vld [vmem:[#allocation5 + $0x18] sm:$0xff]  }
 0xdeb   :  { %v2820_v38 = vpop.f32.mrf.mxu1  ;;  %v1905_v10 = vsel %vm366_vm1, %v1311_v30, %v2941_v46  ;;  %v1906_v34 = vsel %vm366_vm1, %v1312_v20, %v2942_v57  ;;  %v3180_v30 = vld [vmem:[%s4226_s0 + $0x38] sm:$0xff]  ;;  %2838 = vmatprep.subr.bf16.mxu0 %v2984_v24 }
 0xdec   :  { %v1855_v19 = vmul.f32 %v3127_v12, %v2820_v38  ;;  %v2945_v17 = vpop.permute.xlu1 %2944  ;;  %2839 = vmatpush3.bf16.msra.mxu0 %v2984_v24 }
 0xded   :  { %v1834_v29 = vpop.f32.mrf.mxu1  ;;  %v2947_v15 = vunpack.i.h.bf16 %v2945_v17  ;;  %v2946_v45 = vunpack.i.l.bf16 %v2945_v17 }
 0xdee   :  { %v1853_v48 = vmul.f32 %v3125_v37, %v1834_v29 }
 0xdef   :  { %v2821_v59 = vpop.f32.mrf.mxu1  ;;  %v1908_v16 = vsel %vm366_vm1, %v1314_v9, %v2947_v15  ;;  %v1907_v44 = vsel %vm366_vm1, %v1313_v2, %v2946_v45  ;;  %v3179_v9 = vld [vmem:[%s4226_s0 + $0x28] sm:$0xff] }
 0xdf0   :  { %v1856_v49 = vmul.f32 %v3129_v41, %v2821_v59  ;;  %v2950_v3 = vpop.permute.xlu0 %2949  ;;  %v3173_v41 = vld [vmem:[%s4226_s0] sm:$0xff] }
 0xdf1   :  { %v1837_v43 = vpop.f32.mrf.mxu1  ;;  %v2952_v40 = vunpack.i.h.bf16 %v2950_v3  ;;  %v2951_v21 = vunpack.i.l.bf16 %v2950_v3  ;;  %v3177_v3 = vld [vmem:[%s4226_s0 + $0x20] sm:$0xff] }
 0xdf2   :  { %v2963_v51 = vpack.i.bf16 %v1856_v49, %v1855_v19  ;;  %v1854_v63 = vmul.f32 %v3131_v1, %v1837_v43  ;;  %v3174_v19 = vld [vmem:[%s4226_s0 + $0x10] sm:$0xff] }
 0xdf3   :  { %v1909_v13 = vsel %vm432_vm4, %v1905_v10, %v2951_v21  ;;  %v1910_v56 = vsel %vm432_vm4, %v1906_v34, %v2952_v40 }
 0xdf4   :  { %v2958_v18 = vpack.i.bf16 %v1854_v63, %v1853_v48  ;;  %2964 = vrot.lane.b32.xlu1 %v2963_v51, %s3254_s3  ;;  %v2955_v55 = vpop.permute.xlu1 %2954  ;;  %v3175_v51 = vld [vmem:[%s4226_s0 + $0x8] sm:$0xff] }
 0xdf5   :  { %v2957_v0 = vunpack.i.h.bf16 %v2955_v55  ;;  %v2956_v50 = vunpack.i.l.bf16 %v2955_v55 }
 0xdf6   :  { %2959 = vrot.lane.b32.xlu0 %v2958_v18, %s3254_s3  ;;  %v3176_v18 = vld [vmem:[%s4226_s0 + $0x18] sm:$0xff] }
 0xdf7   :  { %v1911_v36 = vsel %vm432_vm4, %v1907_v44, %v2956_v50  ;;  %v1912_v11 = vsel %vm432_vm4, %v1908_v16, %v2957_v0  ;;  %v3178_v0 = vld [vmem:[%s4226_s0 + $0x30] sm:$0xff] }
 0xe66   :  { %v2965_v39 = vpop.permute.xlu1 %2964 }
 0xe67   :  { %v2967_v53 = vunpack.i.h.bf16 %v2965_v39  ;;  %v2966_v61 = vunpack.i.l.bf16 %v2965_v39 }
 0xe68   :  { %v2960_v27 = vpop.permute.xlu0 %2959 }
 0xe69   :  { %v1915_v28 = vsel %vm1134_vm7, %v1911_v36, %v2966_v61  ;;  %v1916_v33 = vsel %vm1134_vm7, %v1912_v11, %v2967_v53  ;;  %v2962_v14 = vunpack.i.h.bf16 %v2960_v27  ;;  %v2961_v32 = vunpack.i.l.bf16 %v2960_v27 }
 0xe6a   :  { %v1920_v25 = vpack.c.bf16 %v1916_v33, %v1915_v28 }
 0xe6b   :  { %v1913_v62 = vsel %vm1134_vm7, %v1909_v13, %v2961_v32  ;;  %v1914_v23 = vsel %vm1134_vm7, %v1910_v56, %v2962_v14 }
 0xe6c   :  { %v1919_v52 = vpack.c.bf16 %v1914_v23, %v1913_v62 }
 0xe6e   :  { %2834 = vmatprep.mubr.msk.bf16.mxu1 %vm68_vm0, %v1919_v52 }
 0xe6f   :  { %2835 = vmatmul.mubr.msk.bf16.gmra.mxu1 %vm68_vm0, %v1920_v25 }
 0xeaa   :  { %v2832_v26 = vpop.f32.mrf.mxu1 }
 0xeab   :  { %v2012_v37 = vadd.f32 %v2832_v26, %v1932_v4  ;;  %v2986_v26 = vld [vmem:[#allocation5 + $0x8] sm:$0xff]  }
 0xeac   :  { %v2003_v6 = vpop.f32.mrf.mxu1 }
 0xead   :  { %v2004_v38 = vadd.f32 %v2003_v6, %v1932_v4  ;;  %v4033_v49 = vadd.f32 %v3174_v19, %v2012_v37  ;;  %v2987_v6 = vld [vmem:[#allocation5] sm:$0xff]  }
 0xeae   :  { %v2833_v12 = vpop.f32.mrf.mxu1 }
 0xeaf   :  { %v4028_v29 = vadd.f32 %v3173_v41, %v2004_v38  ;;  %v2015_v1 = vadd.f32 %v2833_v12, %v1932_v4  ;;  %v2048_v22 = vsel %vm68_vm0, %v4033_v49, 0.0 }
 0xeb0   :  { %v2006_v59 = vpop.f32.mrf.mxu1 }
 0xeb1   :  { %v2007_v43 = vadd.f32 %v2006_v59, %v1932_v4  ;;  %v2042_v48 = vsel %vm68_vm0, %v4028_v29, 0.0  ;;  %v4045_v17 = vadd.f32 %v3176_v18, %v2015_v1 }
 0xeb2   :  { %2043 = vadd.xlane.f32.xlu0 %v2042_v48 }
 0xeb3   :  { %v4040_v63 = vadd.f32 %v3175_v51, %v2007_v43  ;;  %v2051_v58 = vsel %vm68_vm0, %v4045_v17, 0.0 }
 0xeb5   :  { %v2045_v5 = vsel %vm68_vm0, %v4040_v63, 0.0 }
 0xeb6   :  { %2046 = vadd.xlane.f32.xlu1 %v2045_v5  ;;  %2049 = vadd.xlane.f32.xlu0 %v2048_v22 }
 0xeba   :  { %2052 = vadd.xlane.f32.xlu0 %v2051_v58 }
 0xf2f   :  { %v2836_v55 = vpop.f32.mrf.mxu1 }
 0xf30   :  { %v2028_v60 = vadd.f32 %v2836_v55, %v1932_v4 }
 0xf31   :  { %v2019_v47 = vpop.f32.mrf.mxu1 }
 0xf32   :  { %v2020_v15 = vadd.f32 %v2019_v47, %v1932_v4  ;;  %v4061_v50 = vadd.f32 %v3178_v0, %v2028_v60 }
 0xf33   :  { %v2837_v45 = vpop.f32.mrf.mxu1 }
 0xf34   :  { %v4056_v57 = vadd.f32 %v3177_v3, %v2020_v15  ;;  %v2031_v7 = vadd.f32 %v2837_v45, %v1932_v4  ;;  %v2060_v40 = vsel %vm68_vm0, %v4061_v50, 0.0 }
 0xf35   :  { %v2022_v46 = vpop.f32.mrf.mxu1 }
 0xf36   :  { %v2023_v2 = vadd.f32 %v2022_v46, %v1932_v4  ;;  %v2054_v8 = vsel %vm68_vm0, %v4056_v57, 0.0  ;;  %v4073_v35 = vadd.f32 %v3180_v30, %v2031_v7  ;;  %v2985_v4 = vld [vmem:[#allocation5 + $0x10] sm:$0xff]  }
 0xf37   :  { %2055 = vadd.xlane.f32.xlu0 %v2054_v8  ;;  %2840 = vmatprep.subr.bf16.mxu0 %v2985_v4 }
 0xf38   :  { %v4068_v31 = vadd.f32 %v3179_v9, %v2023_v2  ;;  %v2063_v44 = vsel %vm68_vm0, %v4073_v35, 0.0  ;;  %2841 = vmatpush3.bf16.msra.mxu0 %v2985_v4 }
 0xf39   :  { %2842 = vmatprep.subr.bf16.mxu0 %v2986_v26 }
 0xf3a   :  { %v2057_v20 = vsel %vm68_vm0, %v4068_v31, 0.0 }
 0xf3b   :  { %2058 = vadd.xlane.f32.xlu1 %v2057_v20  ;;  %2061 = vadd.xlane.f32.xlu0 %v2060_v40  ;;  %v2044_v21 = vpop.xlane.xlu0 %2043 }
 0xf3c   :  { %v2066_v39 = vmul.f32 0.015625, %v2044_v21  ;;  %2843 = vmatpush3.bf16.msra.mxu0 %v2986_v26 }
 0xf3d   :  { %2844 = vmatprep.subr.bf16.mxu0 %v2987_v6 }
 0xf3e   :  { %v4080_v16 = vsub.f32 %v4028_v29, %v2066_v39 }
 0xf3f   :  { %2064 = vadd.xlane.f32.xlu1 %v2063_v44  ;;  %v2047_v53 = vpop.xlane.xlu1 %2046  ;;  %v2050_v61 = vpop.xlane.xlu0 %2049 }
 0xf40   :  { %v2067_v10 = vmul.f32 0.015625, %v2047_v53  ;;  %v2068_v34 = vmul.f32 0.015625, %v2050_v61  ;;  %v2082_v36 = vmul.f32 %v4080_v16, %v4080_v16  ;;  %2845 = vmatpush3.bf16.msra.mxu0 %v2987_v6  ;;  %v2148_v53 = vsub.s32 2, %v4264_v42 }
 0xf42   :  { %v4087_v11 = vsub.f32 %v4040_v63, %v2067_v10  ;;  %v4090_v27 = vsub.f32 %v4033_v49, %v2068_v34  ;;  %v2090_v28 = vsel %vm68_vm0, %v2082_v36, 0.0  ;;  %v4132_v34 = vrot.slane %v4022_v54, %v2148_v53 }
 0xf43   :  { %2091 = vadd.xlane.f32.xlu0 %v2090_v28  ;;  %v2053_v33 = vpop.xlane.xlu0 %2052  ;;  %v2160_v36 = vsub.s32 3, %v4264_v42 }
 0xf44   :  { %v2069_v14 = vmul.f32 0.015625, %v2053_v33  ;;  %v2083_v32 = vmul.f32 %v4087_v11, %v4087_v11  ;;  %v2084_v13 = vmul.f32 %v4090_v27, %v4090_v27 }
 0xf46   :  { %v4098_v56 = vsub.f32 %v4045_v17, %v2069_v14  ;;  %v2093_v25 = vsel %vm68_vm0, %v2083_v32, 0.0  ;;  %v2096_v62 = vsel %vm68_vm0, %v2084_v13, 0.0  ;;  %v4138_v13 = vrot.slane %v4022_v54, %v2160_v36 }
 0xf47   :  { %2094 = vadd.xlane.f32.xlu1 %v2093_v25  ;;  %2097 = vadd.xlane.f32.xlu0 %v2096_v62 }
 0xf48   :  { %v2085_v23 = vmul.f32 %v4098_v56, %v4098_v56 }
 0xf4a   :  { %v2099_v52 = vsel %vm68_vm0, %v2085_v23, 0.0 }
 0xf4b   :  { %2100 = vadd.xlane.f32.xlu1 %v2099_v52 }
 0xfc0   :  { %v2056_v37 = vpop.xlane.xlu0 %2055 }
 0xfc1   :  { %v2070_v38 = vmul.f32 0.015625, %v2056_v37 }
 0xfc3   :  { %v4106_v12 = vsub.f32 %v4056_v57, %v2070_v38  ;;  %v2989_v38 = vld [vmem:[%s4233_s7 + $0x30] sm:$0xff]  }
 0xfc4   :  { %v2059_v41 = vpop.xlane.xlu1 %2058  ;;  %v2062_v59 = vpop.xlane.xlu0 %2061 }
 0xfc5   :  { %v2071_v19 = vmul.f32 0.015625, %v2059_v41  ;;  %v2072_v1 = vmul.f32 0.015625, %v2062_v59  ;;  %v2086_v43 = vmul.f32 %v4106_v12, %v4106_v12  ;;  %v2990_v41 = vld [vmem:[%s4233_s7 + $0x28] sm:$0xff]   ;;  %v2991_v59 = vld [vmem:[%s4233_s7 + $0x20] sm:$0xff]  }
 0xfc7   :  { %v4111_v48 = vsub.f32 %v4068_v31, %v2071_v19  ;;  %v4114_v51 = vsub.f32 %v4061_v50, %v2072_v1  ;;  %v2102_v18 = vsel %vm68_vm0, %v2086_v43, 0.0  ;;  %v2992_v19 = vld [vmem:[%s4233_s7 + $0x18] sm:$0xff]   ;;  %v2993_v1 = vld [vmem:[%s4233_s7 + $0x10] sm:$0xff]   ;;  %v2994_v43 = vld [vmem:[%s4233_s7 + $0x8] sm:$0xff]  }
 0xfc8   :  { %v2065_v5 = vpop.xlane.xlu1 %2064  ;;  %2103 = vadd.xlane.f32.xlu0 %v2102_v18  ;;  %v2995_v18 = vld [vmem:[%s4233_s7] sm:$0xff]  }
 0xfc9   :  { %v2073_v22 = vmul.f32 0.015625, %v2065_v5  ;;  %v2087_v58 = vmul.f32 %v4111_v48, %v4111_v48  ;;  %v2088_v55 = vmul.f32 %v4114_v51, %v4114_v51 }
 0xfcb   :  { %v4122_v47 = vsub.f32 %v4073_v35, %v2073_v22  ;;  %v2105_v60 = vsel %vm68_vm0, %v2087_v58, 0.0  ;;  %v2108_v15 = vsel %vm68_vm0, %v2088_v55, 0.0 }
 0xfcc   :  { %2106 = vadd.xlane.f32.xlu1 %v2105_v60  ;;  %2109 = vadd.xlane.f32.xlu0 %v2108_v15  ;;  %v2092_v45 = vpop.xlane.xlu0 %2091 }
 0xfcd   :  { %v2114_v3 = vmul.f32 0.015625, %v2092_v45  ;;  %v2089_v46 = vmul.f32 %v4122_v47, %v4122_v47 }
 0xfcf   :  { %v2122_v0 = vadd.f32 1e-05, %v2114_v3  ;;  %v2111_v7 = vsel %vm68_vm0, %v2089_v46, 0.0 }
 0xfd0   :  { %v2095_v2 = vpop.xlane.xlu1 %2094  ;;  %2112 = vadd.xlane.f32.xlu1 %v2111_v7  ;;  %v2098_v8 = vpop.xlane.xlu0 %2097 }
 0xfd1   :  { %3140 = vrsqrt.f32 %v2122_v0  ;;  %v2115_v9 = vmul.f32 0.015625, %v2095_v2  ;;  %v2116_v30 = vmul.f32 0.015625, %v2098_v8 }
 0xfd3   :  { %v2123_v20 = vadd.f32 1e-05, %v2115_v9  ;;  %v2124_v40 = vadd.f32 1e-05, %v2116_v30 }
 0xfd4   :  { %v2101_v21 = vpop.xlane.xlu1 %2100 }
 0xfd5   :  { %3142 = vrsqrt.f32 %v2123_v20  ;;  %v2117_v39 = vmul.f32 0.015625, %v2101_v21 }
 0xfd6   :  { %3144 = vrsqrt.f32 %v2124_v40 }
 0xfd7   :  { %v2125_v44 = vadd.f32 1e-05, %v2117_v39 }
 0xfd9   :  { %3146 = vrsqrt.f32 %v2125_v44 }
 0xfde   :  { %v3141_v61 = vpop.eup %3140 }
 0xfdf   :  { %v2138_v10 = vmul.f32 %v3141_v61, %v4080_v16 }
 0xfe1   :  { %v2150_v32 = vmul.f32 %v4132_v34, %v2138_v10 }
 0xfe2   :  { %v3143_v28 = vpop.eup %3142 }
 0xfe3   :  { %v3145_v33 = vpop.eup %3144  ;;  %v2139_v14 = vmul.f32 %v3143_v28, %v4087_v11  ;;  %v2162_v52 = vadd.f32 %v4138_v13, %v2150_v32  ;;  %v4192_v32 = vld [vmem:[%s4232_s6] ss:$0 sm:$0xff]  ;;  %s3260_s6 = smov [#allocation7]  }
 0xfe4   :  { %v2140_v25 = vmul.f32 %v3145_v33, %v4090_v27  ;;  %s2520_s16 = sshll.u32 %s3260_s6, 4  ;;  %s2521_s16 = int_to_ptr.vmem [resolvable:$true] %s2520_s16 }
 0xfe5   :  { %v2151_v62 = vmul.f32 %v4132_v34, %v2139_v14  ;;  %s3221_s17 = scalar_lea.vmem %s2521_s16, 1024  ;;  %p3226_p11 = scmp.lt.s32.totalorder %s2521_s16, %s2521_s16 }
 0xfe6   :  { %v3147_v23 = vpop.eup %3146  ;;  %v2152_v4 = vmul.f32 %v4132_v34, %v2140_v25  ;;  %p3222_p10 = scmp.ne.s32.totalorder %s2521_s16, %s3221_s17  ;;  %p3227_p12 = scmp.lt.s32.totalorder %s3221_s17, %s3221_s17 }
 0xfe7   :  { %v2141_v16 = vmul.f32 %v3147_v23, %v4098_v56  ;;  %v2163_v24 = vadd.f32 %v4138_v13, %v2151_v62  ;;  %v2988_v56 = vld [vmem:[%s4233_s7 + $0x38] sm:$0xff]  }
 0xfe8   :  { %v2164_v6 = vadd.f32 %v4138_v13, %v2152_v4  ;;  %2854 = vmatprep.subr.bf16.mxu1 %v2988_v56  ;;  %p3228_p13 = por %p3227_p12, %p3226_p11 }
 0xfe9   :  { %v2170_v26 = vpack.c.bf16 %v2163_v24, %v2162_v52  ;;  %v2153_v11 = vmul.f32 %v4132_v34, %v2141_v16  ;;  %2855 = vmatpush3.bf16.msra.mxu1 %v2988_v56 }
 0xfea   :  { %2856 = vmatprep.subr.bf16.mxu1 %v2989_v38  ;;  %p3229_p0 = pnand %p3228_p13, %p3222_p10 }
 0xfeb   :  { %2846 = vmatprep.mubr.msk.bf16.mxu0 %vm68_vm0, %v2170_v26  ;;  %v2165_v27 = vadd.f32 %v4138_v13, %v2153_v11 }
 0xfed   :  { %v2171_v37 = vpack.c.bf16 %v2165_v27, %v2164_v6  ;;  %2857 = vmatpush3.bf16.msra.mxu1 %v2989_v38 }
 0xfee   :  { %2858 = vmatprep.subr.bf16.mxu1 %v2990_v41 }
 0xfef   :  { %2847 = vmatmul.mubr.msk.bf16.vlgmr.msra.gmra.mxu0 %vm68_vm0, %v2171_v37 }
 0xff1   :  { %2859 = vmatpush3.bf16.msra.mxu1 %v2990_v41 }
 0xff2   :  { %2860 = vmatprep.subr.bf16.mxu1 %v2991_v59 }
 0xff5   :  { %2861 = vmatpush3.bf16.msra.mxu1 %v2991_v59 }
 0xff6   :  { %2862 = vmatprep.subr.bf16.mxu1 %v2992_v19 }
 0xff9   :  { %2863 = vmatpush3.bf16.msra.mxu1 %v2992_v19 }
 0xffa   :  { %2864 = vmatprep.subr.bf16.mxu1 %v2993_v1 }
 0xffd   :  { %2865 = vmatpush3.bf16.msra.mxu1 %v2993_v1 }
 0xffe   :  { %2866 = vmatprep.subr.bf16.mxu1 %v2994_v43 }
0x1001   :  { %2867 = vmatpush3.bf16.msra.mxu1 %v2994_v43 }
0x1002   :  { %2868 = vmatprep.subr.bf16.mxu1 %v2995_v18 }
0x1005   :  { %2869 = vmatpush3.bf16.msra.mxu1 %v2995_v18 }
0x1051   :  { %v2104_v5 = vpop.xlane.xlu0 %2103 }
0x1052   :  { %v2118_v22 = vmul.f32 0.015625, %v2104_v5 }
0x1054   :  { %v2126_v58 = vadd.f32 1e-05, %v2118_v22 }
0x1055   :  { %v2107_v55 = vpop.xlane.xlu1 %2106  ;;  %v2110_v60 = vpop.xlane.xlu0 %2109 }
0x1056   :  { %3148 = vrsqrt.f32 %v2126_v58  ;;  %v2119_v15 = vmul.f32 0.015625, %v2107_v55  ;;  %v2120_v45 = vmul.f32 0.015625, %v2110_v60 }
0x1058   :  { %v2127_v3 = vadd.f32 1e-05, %v2119_v15  ;;  %v2128_v46 = vadd.f32 1e-05, %v2120_v45 }
0x1059   :  { %v2113_v0 = vpop.xlane.xlu1 %2112 }
0x105a   :  { %3150 = vrsqrt.f32 %v2127_v3  ;;  %v2121_v7 = vmul.f32 0.015625, %v2113_v0 }
0x105b   :  { %3152 = vrsqrt.f32 %v2128_v46 }
0x105c   :  { %v2129_v2 = vadd.f32 1e-05, %v2121_v7 }
0x105e   :  { %3154 = vrsqrt.f32 %v2129_v2 }
0x1063   :  { %v3149_v8 = vpop.eup %3148 }
0x1064   :  { %v2142_v9 = vmul.f32 %v3149_v8, %v4106_v12 }
0x1066   :  { %v2154_v21 = vmul.f32 %v4132_v34, %v2142_v9 }
0x1067   :  { %v3151_v30 = vpop.eup %3150 }
0x1068   :  { %v3153_v20 = vpop.eup %3152  ;;  %v2143_v40 = vmul.f32 %v3151_v30, %v4111_v48  ;;  %v2166_v61 = vadd.f32 %v4138_v13, %v2154_v21 }
0x1069   :  { %v2144_v39 = vmul.f32 %v3153_v20, %v4114_v51 }
0x106a   :  { %v2155_v44 = vmul.f32 %v4132_v34, %v2143_v40 }
0x106b   :  { %v3155_v53 = vpop.eup %3154  ;;  %v2156_v28 = vmul.f32 %v4132_v34, %v2144_v39 }
0x106c   :  { %v2167_v10 = vadd.f32 %v4138_v13, %v2155_v44  ;;  %v2145_v36 = vmul.f32 %v3155_v53, %v4122_v47 }
0x106d   :  { %v2168_v48 = vadd.f32 %v4138_v13, %v2156_v28 }
0x106e   :  { %v2172_v12 = vpack.c.bf16 %v2167_v10, %v2166_v61  ;;  %v2157_v33 = vmul.f32 %v4132_v34, %v2145_v36 }
0x1070   :  { %2850 = vmatprep.mubr.msk.bf16.mxu0 %vm68_vm0, %v2172_v12  ;;  %v2169_v51 = vadd.f32 %v4138_v13, %v2157_v33 }
0x1072   :  { %v2173_v14 = vpack.c.bf16 %v2169_v51, %v2168_v48 }
0x1074   :  { %2851 = vmatmul.mubr.msk.bf16.gmra.mxu0 %vm68_vm0, %v2173_v14 }
0x10af   :  { %v2848_v47 = vpop.f32.mrf.mxu0 }
0x10b0   :  { %v2268_v25 = vadd.f32 %v2848_v47, %v4192_v32 }
0x10b1   :  { %v2259_v62 = vpop.f32.mrf.mxu0 }
0x10b2   :  { %v2300_v23 = vmul.f32 %v2268_v25, %v2268_v25  ;;  %v2260_v34 = vadd.f32 %v4192_v32, %v2259_v62  ;;  %v2292_v40 = vmul.f32 0.5, %v2268_v25 }
0x10b3   :  { %v2849_v16 = vpop.f32.mrf.mxu0 }
0x10b4   :  { %v2308_v52 = vmul.f32 %v2300_v23, %v2268_v25  ;;  %v2298_v24 = vmul.f32 %v2260_v34, %v2260_v34  ;;  %v2271_v13 = vadd.f32 %v2849_v16, %v4192_v32  ;;  %v2290_v9 = vmul.f32 0.5, %v2260_v34 }
0x10b5   :  { %v2262_v4 = vpop.f32.mrf.mxu0 }
0x10b6   :  { %v2316_v26 = vmul.f32 0.044715, %v2308_v52  ;;  %v2306_v11 = vmul.f32 %v2298_v24, %v2260_v34  ;;  %v2301_v6 = vmul.f32 %v2271_v13, %v2271_v13  ;;  %v2263_v27 = vadd.f32 %v4192_v32, %v2262_v4 }
0x10b7   :  { %v2293_v8 = vmul.f32 0.5, %v2271_v13 }
0x10b8   :  { %v2324_v37 = vadd.f32 %v2316_v26, %v2268_v25  ;;  %v2314_v56 = vmul.f32 0.044715, %v2306_v11  ;;  %v2309_v38 = vmul.f32 %v2301_v6, %v2271_v13  ;;  %v2299_v41 = vmul.f32 %v2263_v27, %v2263_v27 }
0x10b9   :  { %v2291_v30 = vmul.f32 0.5, %v2263_v27 }
0x10ba   :  { %v2332_v59 = vmul.f32 0.7978846, %v2324_v37  ;;  %v2322_v19 = vadd.f32 %v2314_v56, %v2260_v34  ;;  %v2317_v1 = vmul.f32 0.044715, %v2309_v38  ;;  %v2307_v43 = vmul.f32 %v2299_v41, %v2263_v27 }
0x10bc   :  { %v2330_v18 = vmul.f32 0.7978846, %v2322_v19  ;;  %v2325_v5 = vadd.f32 %v2317_v1, %v2271_v13  ;;  %v2315_v22 = vmul.f32 0.044715, %v2307_v43  ;;  %3156 = vtanh.f32 %v2332_v59 }
0x10be   :  { %v2333_v58 = vmul.f32 0.7978846, %v2325_v5  ;;  %3158 = vtanh.f32 %v2330_v18  ;;  %v2323_v55 = vadd.f32 %v2315_v22, %v2263_v27 }
0x10c0   :  { %3160 = vtanh.f32 %v2333_v58  ;;  %v2331_v60 = vmul.f32 0.7978846, %v2323_v55 }
0x10c2   :  { %3162 = vtanh.f32 %v2331_v60 }
0x10c9   :  { %v3157_v15 = vpop.eup %3156 }
0x10ca   :  { %v2348_v2 = vadd.f32 1.0, %v3157_v15 }
0x10cb   :  { %v3159_v45 = vpop.eup %3158 }
0x10cc   :  { %v2346_v0 = vadd.f32 1.0, %v3159_v45  ;;  %v2356_v53 = vmul.f32 %v2348_v2, %v2292_v40 }
0x10cd   :  { %v3161_v3 = vpop.eup %3160 }
0x10ce   :  { %v2349_v46 = vadd.f32 1.0, %v3161_v3  ;;  %v2354_v39 = vmul.f32 %v2346_v0, %v2290_v9 }
0x10cf   :  { %v3163_v7 = vpop.eup %3162 }
0x10d0   :  { %v2347_v20 = vadd.f32 1.0, %v3163_v7  ;;  %v2357_v21 = vmul.f32 %v2349_v46, %v2293_v8 }
0x10d2   :  { %v2355_v44 = vmul.f32 %v2347_v20, %v2291_v30  ;;  %v2363_v10 = vpack.c.bf16 %v2357_v21, %v2356_v53  ;;  %v2384_v20 = vsub.s32 5, %v4264_v42 }
0x10d4   :  { %v2362_v61 = vpack.c.bf16 %v2355_v44, %v2354_v39  ;;  %v2385_v40 = vrot.slane %v4022_v54, %v2384_v20 }
0x10d6   :  { %2870 = vmatprep.mubr.bf16.mxu1 %v2362_v61 }
0x10d7   :  { %2871 = vmatmul.mubr.bf16.vlgmr.msra.gmra.mxu1 %v2363_v10 }
0x1134   :  { %v2852_v36 = vpop.f32.mrf.mxu0 }
0x1135   :  { %v2284_v28 = vadd.f32 %v2852_v36, %v4192_v32 }
0x1136   :  { %v2275_v12 = vpop.f32.mrf.mxu0 }
0x1137   :  { %v2304_v33 = vmul.f32 %v2284_v28, %v2284_v28  ;;  %v2276_v48 = vadd.f32 %v4192_v32, %v2275_v12  ;;  %v2296_v46 = vmul.f32 0.5, %v2284_v28 }
0x1138   :  { %v2853_v51 = vpop.f32.mrf.mxu0 }
0x1139   :  { %v2312_v14 = vmul.f32 %v2304_v33, %v2284_v28  ;;  %v2302_v47 = vmul.f32 %v2276_v48, %v2276_v48  ;;  %v2287_v25 = vadd.f32 %v2853_v51, %v4192_v32  ;;  %v2294_v15 = vmul.f32 0.5, %v2276_v48 }
0x113a   :  { %v2278_v62 = vpop.f32.mrf.mxu0 }
0x113b   :  { %v2320_v23 = vmul.f32 0.044715, %v2312_v14  ;;  %v2310_v34 = vmul.f32 %v2302_v47, %v2276_v48  ;;  %v2305_v16 = vmul.f32 %v2287_v25, %v2287_v25  ;;  %v2279_v52 = vadd.f32 %v4192_v32, %v2278_v62 }
0x113c   :  { %v2297_v55 = vmul.f32 0.5, %v2287_v25 }
0x113d   :  { %v2328_v24 = vadd.f32 %v2320_v23, %v2284_v28  ;;  %v2318_v13 = vmul.f32 0.044715, %v2310_v34  ;;  %v2313_v4 = vmul.f32 %v2305_v16, %v2287_v25  ;;  %v2303_v26 = vmul.f32 %v2279_v52, %v2279_v52 }
0x113e   :  { %v2295_v45 = vmul.f32 0.5, %v2279_v52 }
0x113f   :  { %v2326_v11 = vadd.f32 %v2318_v13, %v2276_v48  ;;  %v2321_v6 = vmul.f32 0.044715, %v2313_v4  ;;  %v2311_v27 = vmul.f32 %v2303_v26, %v2279_v52  ;;  %v2336_v37 = vmul.f32 0.7978846, %v2328_v24 }
0x1141   :  { %v2334_v56 = vmul.f32 0.7978846, %v2326_v11  ;;  %v2329_v38 = vadd.f32 %v2321_v6, %v2287_v25  ;;  %v2319_v41 = vmul.f32 0.044715, %v2311_v27 }
0x1143   :  { %3164 = vtanh.f32 %v2334_v56  ;;  %v2337_v59 = vmul.f32 0.7978846, %v2329_v38  ;;  %v2327_v19 = vadd.f32 %v2319_v41, %v2279_v52 }
0x1144   :  { %3166 = vtanh.f32 %v2336_v37 }
0x1145   :  { %3168 = vtanh.f32 %v2337_v59  ;;  %v2335_v1 = vmul.f32 0.7978846, %v2327_v19 }
0x1147   :  { %3170 = vtanh.f32 %v2335_v1 }
0x1150   :  { %v3165_v43 = vpop.eup %3164 }
0x1151   :  { %v3167_v32 = vpop.eup %3166  ;;  %v2350_v5 = vadd.f32 1.0, %v3165_v43 }
0x1152   :  { %v3169_v18 = vpop.eup %3168  ;;  %v2352_v60 = vadd.f32 1.0, %v3167_v32 }
0x1153   :  { %v2353_v22 = vadd.f32 1.0, %v3169_v18  ;;  %v2358_v7 = vmul.f32 %v2350_v5, %v2294_v15 }
0x1154   :  { %v3171_v58 = vpop.eup %3170  ;;  %v2360_v8 = vmul.f32 %v2352_v60, %v2296_v46 }
0x1155   :  { %v2351_v3 = vadd.f32 1.0, %v3171_v58  ;;  %v2361_v0 = vmul.f32 %v2353_v22, %v2297_v55 }
0x1157   :  { %v2359_v2 = vmul.f32 %v2351_v3, %v2295_v45  ;;  %v2365_v30 = vpack.c.bf16 %v2361_v0, %v2360_v8 }
0x1159   :  { %v2364_v9 = vpack.c.bf16 %v2359_v2, %v2358_v7 }
0x115b   :  { %2874 = vmatprep.mubr.bf16.mxu1 %v2364_v9 }
0x115c   :  { %2875 = vmatmul.mubr.bf16.gmra.mxu1 %v2365_v30 }
0x1197   :  { %v2872_v21 = vpop.f32.mrf.mxu1 }
0x1198   :  { %v2477_v39 = vadd.f32 %v2872_v21, %v2385_v40 }
0x1199   :  { %v2468_v44 = vpop.f32.mrf.mxu1 }
0x119a   :  { %v2501_v53 = vadd.f32 %v2477_v39, %v4033_v49  ;;  %v2469_v61 = vadd.f32 %v2468_v44, %v2385_v40 }
0x119b   :  { %v2873_v10 = vpop.f32.mrf.mxu1 }
0x119c   :  { %2509 = vst.msk [vmem:[#allocation7 + $0x10] sm:$0xff] %vm68_vm0, %v2501_v53  ;;  %v2499_v36 = vadd.f32 %v2469_v61, %v4028_v29  ;;  %v2480_v28 = vadd.f32 %v2873_v10, %v2385_v40 }
0x119d   :  { %v2471_v12 = vpop.f32.mrf.mxu1 }
0x119e   :  { %2507 = vst.msk [vmem:[#allocation7] sm:$0xff] %vm68_vm0, %v2499_v36  ;;  %v2502_v33 = vadd.f32 %v2480_v28, %v4045_v17  ;;  %v2472_v42 = vadd.f32 %v2471_v12, %v2385_v40 }
0x11a0   :  { %2510 = vst.msk [vmem:[#allocation7 + $0x18] sm:$0xff] %vm68_vm0, %v2502_v33  ;;  %v2500_v54 = vadd.f32 %v2472_v42, %v4040_v63 }
0x11a2   :  { %2508 = vst.msk [vmem:[#allocation7 + $0x8] sm:$0xff] %vm68_vm0, %v2500_v54 }
0x121c   :  { %v2876_v49 = vpop.f32.mrf.mxu1 }
0x121d   :  { %v2493_v48 = vadd.f32 %v2876_v49, %v2385_v40 }
0x121e   :  { %v2484_v51 = vpop.f32.mrf.mxu1 }
0x121f   :  { %v2505_v14 = vadd.f32 %v2493_v48, %v4061_v50  ;;  %v2485_v47 = vadd.f32 %v2484_v51, %v2385_v40 }
0x1220   :  { %v2877_v29 = vpop.f32.mrf.mxu1 }
0x1221   :  { %2513 = vst.msk [vmem:[#allocation7 + $0x30] sm:$0xff] %vm68_vm0, %v2505_v14  ;;  %v2503_v25 = vadd.f32 %v2485_v47, %v4056_v57  ;;  %v2496_v62 = vadd.f32 %v2877_v29, %v2385_v40 }
0x1222   :  { %v2487_v17 = vpop.f32.mrf.mxu1 }
0x1223   :  { %2511 = vst.msk [vmem:[#allocation7 + $0x20] sm:$0xff] %vm68_vm0, %v2503_v25  ;;  %v2506_v63 = vadd.f32 %v2496_v62, %v4073_v35  ;;  %v2488_v23 = vadd.f32 %v2487_v17, %v2385_v40 }
0x1225   :  { %2514 = vst.msk [vmem:[#allocation7 + $0x38] sm:$0xff] %vm68_vm0, %v2506_v63  ;;  %v2504_v34 = vadd.f32 %v2488_v23, %v4068_v31 }
0x1227   :  { %2512 = vst.msk [vmem:[#allocation7 + $0x28] sm:$0xff] %vm68_vm0, %v2504_v34 }
0x1228   :  { %3232 = shalt.err (!%p3229_p0)
}
0x1229   :  { %2526 = dma.vmem_to_hbm [thread:$0]  %s2521_s16, 1024, %s4234_s8, [#allocation4], %s3248_s30, %s3248_s30, %s3249_s9  }
0x122a   :  { %3245 = dma.done.wait [#allocation4], 1024  }
0x122b   :  { %3246 = vsyncadd [#allocation4], 4294966272 }
0x122c   :  { %2530 = vsyncpa [#allocation3], 1 }
0x122d   :  { %2531 = vsyncpa [#allocation6], 1 }
0x122e   :  { %2532 = vsyncpa [#allocation4], 1 }

</bundles_post_ra>
